<compile_context>
chip_gen: v7x
topology: tpu7x:2x2x1
jax: 0.10.0
libtpu: 0.0.40
codegen_flags: <defaults>
</compile_context>

<pallas_src>
import functools

import jax
import jax.numpy as jnp
from jax.experimental import pallas as pl
from jax.experimental.pallas import tpu as pltpu

LN_EPS = 1e-5
NEG_INF = -1e9


# ----------------------------------------------------------------------------
# Small helpers
# ----------------------------------------------------------------------------
@functools.lru_cache(maxsize=None)
def _vmem_limit():
    """~3/4 of physical VMEM, capped at 100 MiB (v7x: ~48 MiB, v5e/v6e: ~96)."""
    try:
        cap = int(pltpu.get_tpu_info().vmem_capacity_bytes)
    except Exception:
        cap = 64 << 20            # conservative (v7x) fallback
    return min((cap * 3) // 4, 100 << 20)


def _cparams(*sem):
    return pltpu.CompilerParams(dimension_semantics=sem,
                                vmem_limit_bytes=_vmem_limit())


def _const(shape):
    """BlockSpec for a grid-constant operand: single-buffered (no double buf)."""
    nd = len(shape)
    return pl.BlockSpec(shape, lambda *_: (0,) * nd,
                        pipeline_mode=pl.Buffered(1))


def _tile(n, target):
    """Full extent when small, else a fixed 8-aligned tile (cdiv + masked edge)."""
    return n if n <= target else target


def _head_group(num_heads, head_dim):
    """Smallest head group G (dividing num_heads) with lane-dense width G*dh."""
    for g in range(1, num_heads + 1):
        if num_heads % g == 0 and (g * head_dim) % 128 == 0:
            return g
    return num_heads                    # fall back to the full d_model width


def _layernorm(y, gamma, beta):
    mean = jnp.mean(y, axis=-1, keepdims=True)
    var = jnp.mean(jnp.square(y - mean), axis=-1, keepdims=True)
    inv = jax.lax.rsqrt(var + LN_EPS)
    return (y - mean) * inv * gamma + beta


# ----------------------------------------------------------------------------
# Pallas kernels
# ----------------------------------------------------------------------------
def _matmul_bias_kernel(x_ref, w_ref, b_ref, o_ref):
    x = x_ref[...].astype(jnp.bfloat16)
    y = jnp.dot(x, w_ref[...], preferred_element_type=jnp.float32) + b_ref[...]
    o_ref[...] = y.astype(o_ref.dtype)


def _qkv_proj_kernel(x_ref, w_ref, b_ref, q_ref, k_ref, v_ref, *, d_model):
    # Single fused (D, 3D) MXU matmul; split at D-aligned column boundaries.
    x = x_ref[...].astype(jnp.bfloat16)
    y = jnp.dot(x, w_ref[...], preferred_element_type=jnp.float32) + b_ref[...]
    q_ref[...] = y[:, :d_model].astype(q_ref.dtype)
    k_ref[...] = y[:, d_model:2 * d_model].astype(k_ref.dtype)
    v_ref[...] = y[:, 2 * d_model:].astype(v_ref.dtype)


def _flash_mha_kernel(lens_ref, q_ref, k_ref, v_ref, o_ref, m_sc, l_sc, acc_sc,
                      *, heads_per_blk, head_dim, tq, tk, scale):
    b = pl.program_id(0)
    qi = pl.program_id(2)
    ki = pl.program_id(3)
    length = lens_ref[b]

    @pl.when(ki == 0)
    def _init():
        m_sc[...] = jnp.full(m_sc.shape, -jnp.inf, m_sc.dtype)
        l_sc[...] = jnp.zeros(l_sc.shape, l_sc.dtype)
        acc_sc[...] = jnp.zeros(acc_sc.shape, acc_sc.dtype)

    # Skip fully padded KV tiles (free SMEM scalar branch).  Tile 0 always
    # runs so the online-softmax state is well defined for every query row.
    @pl.when((ki == 0) | (ki * tk < length))
    def _body():
        q = q_ref[0].astype(jnp.bfloat16)                       # (tq, G*dh)
        k = k_ref[0].astype(jnp.bfloat16)                       # (tk, G*dh)
        kv_col = ki * tk + jax.lax.broadcasted_iota(jnp.int32, (tk, 1), 0)
        v = jnp.where(kv_col < length, v_ref[0], 0).astype(jnp.bfloat16)

        q_pos = qi * tq + jax.lax.broadcasted_iota(jnp.int32, (tq, tk), 0)
        kv_pos = ki * tk + jax.lax.broadcasted_iota(jnp.int32, (tq, tk), 1)
        valid = (q_pos < length) & (kv_pos < length)

        for h in range(heads_per_blk):                          # static unroll
            hs = slice(h * head_dim, (h + 1) * head_dim)
            s = jax.lax.dot_general(q[:, hs], k[:, hs],
                                    (((1,), (1,)), ((), ())),
                                    preferred_element_type=jnp.float32) * scale
            s = jnp.where(valid, s, NEG_INF)
            m_prev = m_sc[:, h:h + 1]
            m_new = jnp.maximum(m_prev, jnp.max(s, axis=-1, keepdims=True))
            alpha = jnp.exp(m_prev - m_new)
            p = jnp.exp(s - m_new)
            l_sc[:, h:h + 1] = (alpha * l_sc[:, h:h + 1]
                                + jnp.sum(p, axis=-1, keepdims=True))
            acc_sc[:, hs] = alpha * acc_sc[:, hs] + jnp.dot(
                p.astype(jnp.bfloat16), v[:, hs],
                preferred_element_type=jnp.float32)
            m_sc[:, h:h + 1] = m_new

    @pl.when(ki == pl.num_programs(3) - 1)
    def _finish():
        for h in range(heads_per_blk):
            hs = slice(h * head_dim, (h + 1) * head_dim)
            inv = pl.reciprocal(l_sc[:, h:h + 1], approx=True)
            o_ref[0, :, hs] = (acc_sc[:, hs] * inv).astype(o_ref.dtype)


def _proj_res_ln_kernel(x_ref, res_ref, w_ref, b_ref, g_ref, be_ref, o_ref):
    # out = LayerNorm((x @ w + b) + residual)
    y = jnp.dot(x_ref[...].astype(jnp.bfloat16), w_ref[...],
                preferred_element_type=jnp.float32) + b_ref[...]
    y = y + res_ref[...].astype(jnp.float32)
    o_ref[...] = _layernorm(y, g_ref[...], be_ref[...]).astype(o_ref.dtype)


def _ffn_res_ln_kernel(x_ref, w1_ref, b1_ref, w2_ref, b2_ref, g_ref, be_ref,
                       o_ref):
    # out = LayerNorm(FFN(x) + x), FFN = Linear -> Swish -> Linear
    x = x_ref[...]
    h = jnp.dot(x.astype(jnp.bfloat16), w1_ref[...],
                preferred_element_type=jnp.float32) + b1_ref[...]
    h = h * jax.nn.sigmoid(h)                                   # Swish (f32)
    y = jnp.dot(h.astype(jnp.bfloat16), w2_ref[...],
                preferred_element_type=jnp.float32) + b2_ref[...]
    y = y + x.astype(jnp.float32)
    o_ref[...] = _layernorm(y, g_ref[...], be_ref[...]).astype(o_ref.dtype)


def _pw1_glu_kernel(lens_ref, x_ref, w_ref, b_ref, o_ref, *, d_model):
    # mask padded frames (from lens, in-kernel) + pointwise conv1 + GLU
    b = pl.program_id(0)
    ti = pl.program_id(1)
    length = lens_ref[b]
    x = x_ref[0]                                                 # (tt, D)
    tt = x.shape[0]
    pos = ti * tt + jax.lax.broadcasted_iota(jnp.int32, (tt, 1), 0)
    x = jnp.where(pos < length, x, 0).astype(jnp.bfloat16)
    y = jnp.dot(x, w_ref[...], preferred_element_type=jnp.float32) + b_ref[...]
    a = y[:, :d_model]
    g = y[:, d_model:]
    o_ref[0] = (a * jax.nn.sigmoid(g)).astype(o_ref.dtype)


def _dwconv_bn_swish_kernel(x_ref, w_ref, b_ref, scale_ref, shift_ref, o_ref,
                            *, kernel_size):
    # Depthwise conv over time via XLU rolls on the resident (T, D) tile with
    # an iota edge mask (no HBM halo copy), then BatchNorm (eval) + Swish.
    x = x_ref[0].astype(jnp.float32)                             # (T, D)
    t = x.shape[0]
    pad = (kernel_size - 1) // 2   # TODO(synk): matches PyTorch 'same' only for odd K
    rows = jax.lax.broadcasted_iota(jnp.int32, (t, 1), 0)
    w_all = w_ref[...]                                           # (K, D)
    acc = jnp.zeros_like(x)
    for kk in range(kernel_size):                                # small static K
        off = kk - pad                                           # out[t] += w[kk]*x[t+off]
        if off == 0:
            shifted = x
        else:
            shifted = pltpu.roll(x, shift=(-off) % t, axis=0)
            src = rows + off
            shifted = jnp.where((src >= 0) & (src < t), shifted, 0.0)
        acc = acc + shifted * w_all[kk][None, :]
    y = acc + b_ref[...]
    y = y * scale_ref[...] + shift_ref[...]                      # BatchNorm (eval)
    o_ref[0] = (y * jax.nn.sigmoid(y)).astype(o_ref.dtype)       # Swish


# ----------------------------------------------------------------------------
# Kernel wrappers (tiled pallas_calls)
# ----------------------------------------------------------------------------
def matmul_bias(x, w, b, out_dtype=jnp.bfloat16):
    M, K = x.shape
    N = w.shape[1]
    tm = _tile(M, 512)
    return pl.pallas_call(
        _matmul_bias_kernel,
        grid=(pl.cdiv(M, tm),),
        in_specs=[pl.BlockSpec((tm, K), lambda i: (i, 0)),
                  _const((K, N)), _const((1, N))],
        out_specs=pl.BlockSpec((tm, N), lambda i: (i, 0)),
        out_shape=jax.ShapeDtypeStruct((M, N), out_dtype),
        compiler_params=_cparams("parallel"),
    )(x, w, b)


def qkv_proj(x2, p):
    M, D = x2.shape
    tm = _tile(M, 512)
    row = pl.BlockSpec((tm, D), lambda i: (i, 0))
    sd = jax.ShapeDtypeStruct((M, D), jnp.bfloat16)
    return pl.pallas_call(
        functools.partial(_qkv_proj_kernel, d_model=D),
        grid=(pl.cdiv(M, tm),),
        in_specs=[row, _const((D, 3 * D)), _const((1, 3 * D))],
        out_specs=(row, row, row),
        out_shape=(sd, sd, sd),
        compiler_params=_cparams("parallel"),
    )(x2, p["w_qkv"], p["b_qkv"])


def flash_mha(q, k, v, lens, num_heads):
    B, T, D = q.shape
    dh = D // num_heads
    G = _head_group(num_heads, dh)           # heads per grid step (lane-dense)
    HG = num_heads // G
    gd = G * dh
    tq = _tile(T, 128)
    tk = _tile(T, 128)
    scale = 1.0 / float(dh) ** 0.5
    kernel = functools.partial(_flash_mha_kernel, heads_per_blk=G, head_dim=dh,
                               tq=tq, tk=tk, scale=scale)
    q_spec = pl.BlockSpec((1, tq, gd), lambda b, hg, qi, ki, lens: (b, qi, hg))
    kv_spec = pl.BlockSpec((1, tk, gd), lambda b, hg, qi, ki, lens: (b, ki, hg))
    o_spec = pl.BlockSpec((1, tq, gd), lambda b, hg, qi, ki, lens: (b, qi, hg))
    return pl.pallas_call(
        kernel,
        out_shape=jax.ShapeDtypeStruct((B, T, D), jnp.bfloat16),
        grid_spec=pltpu.PrefetchScalarGridSpec(
            num_scalar_prefetch=1,
            grid=(B, HG, pl.cdiv(T, tq), pl.cdiv(T, tk)),
            in_specs=[q_spec, kv_spec, kv_spec],
            out_specs=o_spec,
            scratch_shapes=[pltpu.VMEM((tq, G), jnp.float32),
                            pltpu.VMEM((tq, G), jnp.float32),
                            pltpu.VMEM((tq, gd), jnp.float32)],
        ),
        compiler_params=pltpu.CompilerParams(
            dimension_semantics=("parallel", "parallel", "parallel",
                                 "arbitrary"),
            vmem_limit_bytes=_vmem_limit()),
    )(lens, q, k, v)


def proj_res_ln(x2, res2, w, b, ln):
    M, K = x2.shape
    N = w.shape[1]
    tm = _tile(M, 512)
    return pl.pallas_call(
        _proj_res_ln_kernel,
        grid=(pl.cdiv(M, tm),),
        in_specs=[pl.BlockSpec((tm, K), lambda i: (i, 0)),
                  pl.BlockSpec((tm, N), lambda i: (i, 0)),
                  _const((K, N)), _const((1, N)), _const((1, N)),
                  _const((1, N))],
        out_specs=pl.BlockSpec((tm, N), lambda i: (i, 0)),
        out_shape=jax.ShapeDtypeStruct((M, N), jnp.bfloat16),
        compiler_params=_cparams("parallel"),
    )(x2, res2, w, b, ln["gamma"], ln["beta"])


def ffn_res_ln(x2, p, ln):
    M, D = x2.shape
    Dff = p["w1"].shape[1]
    tm = _tile(M, 256)     # budget: 2*(D*4D bf16) + tm*4D f32 + 2*tm*D bf16*2
    return pl.pallas_call(
        _ffn_res_ln_kernel,
        grid=(pl.cdiv(M, tm),),
        in_specs=[pl.BlockSpec((tm, D), lambda i: (i, 0)),
                  _const((D, Dff)), _const((1, Dff)),
                  _const((Dff, D)), _const((1, D)),
                  _const((1, D)), _const((1, D))],
        out_specs=pl.BlockSpec((tm, D), lambda i: (i, 0)),
        out_shape=jax.ShapeDtypeStruct((M, D), jnp.bfloat16),
        compiler_params=_cparams("parallel"),
    )(x2, p["w1"], p["b1"], p["w2"], p["b2"], ln["gamma"], ln["beta"])


def pw1_glu(xs, lens, p):
    B, T, D = xs.shape
    tt = _tile(T, 256)
    spec = pl.BlockSpec((1, tt, D), lambda b, t, lens: (b, t, 0))
    return pl.pallas_call(
        functools.partial(_pw1_glu_kernel, d_model=D),
        out_shape=jax.ShapeDtypeStruct((B, T, D), jnp.bfloat16),
        grid_spec=pltpu.PrefetchScalarGridSpec(
            num_scalar_prefetch=1,
            grid=(B, pl.cdiv(T, tt)),
            in_specs=[spec, _const((D, 2 * D)), _const((1, 2 * D))],
            out_specs=spec,
        ),
        compiler_params=_cparams("parallel", "parallel"),
    )(lens, xs, p["w_pw1"], p["b_pw1"])


def dwconv_bn_swish(h, p):
    B, T, D = h.shape
    K = p["dw_w"].shape[0]
    # TODO(synk): for very long sequences (v7x, 64 MiB VMEM) tile the time axis
    # with an explicit halo instead of keeping the full (T, D) tile resident.
    return pl.pallas_call(
        functools.partial(_dwconv_bn_swish_kernel, kernel_size=K),
        grid=(B,),
        in_specs=[pl.BlockSpec((1, T, D), lambda b: (b, 0, 0)),
                  _const((K, D)), _const((1, D)), _const((1, D)),
                  _const((1, D))],
        out_specs=pl.BlockSpec((1, T, D), lambda b: (b, 0, 0)),
        out_shape=jax.ShapeDtypeStruct((B, T, D), jnp.bfloat16),
        compiler_params=_cparams("parallel"),
    )(h, p["dw_w"], p["dw_b"], p["bn_scale"], p["bn_shift"])


# ----------------------------------------------------------------------------
# Module pieces (thin JAX glue around the kernels)
# ----------------------------------------------------------------------------
def subsampling_forward(xs, x_lens, p):
    # xs: (B, T, F) -> (B, T//4, d_model)
    B, T, F = xs.shape
    k = p["kernel"]
    pad = k // 2
    x = xs[:, None, :, :]                                        # NCHW
    # Frontend Conv2d via XLA's native conv (per perf review); only the
    # d_model projection below runs as a Pallas MXU matmul.
    for wname, bname in (("conv1_w", "conv1_b"), ("conv2_w", "conv2_b")):
        x = jax.lax.conv_general_dilated(
            x, p[wname], window_strides=(2, 2),
            padding=[(pad, pad), (pad, pad)],
            dimension_numbers=("NCHW", "OIHW", "NCHW"))
        x = jnp.maximum(x + p[bname][None, :, None, None], 0.0)   # ReLU
    _, C, Tn, Fn = x.shape
    x = x.transpose(0, 2, 1, 3).reshape(B * Tn, C * Fn)
    d_model = p["proj_w"].shape[1]
    x = matmul_bias(x, p["proj_w"], p["proj_b"]).reshape(B, Tn, d_model)

    def sub_len(l):
        l = (l + 2 * pad - k) // 2 + 1
        l = (l + 2 * pad - k) // 2 + 1
        return l

    return x, sub_len(x_lens)


def attention_subblock(xs, lens, p_attn, p_ln):
    B, T, D = xs.shape
    H = p_attn["num_heads"]
    x2 = xs.reshape(B * T, D)
    q, k, v = qkv_proj(x2, p_attn)                # fused QKV, bf16, (B*T, D)
    ctx = flash_mha(q.reshape(B, T, D), k.reshape(B, T, D), v.reshape(B, T, D),
                    lens, H)                      # (B, T, D), no transposes
    # fused: output projection + residual + LayerNorm
    out = proj_res_ln(ctx.reshape(B * T, D), x2, p_attn["wo"], p_attn["bo"],
                      p_ln)
    return out.reshape(B, T, D)


def conv_subblock(xs, lens, p_conv, p_ln):
    B, T, D = xs.shape
    h = pw1_glu(xs, lens, p_conv)                 # mask (from lens) + pw1 + GLU
    y = dwconv_bn_swish(h, p_conv)                # dwconv + BN + Swish
    # fused: pointwise conv2 + residual + LayerNorm
    out = proj_res_ln(y.reshape(B * T, D), xs.reshape(B * T, D),
                      p_conv["w_pw2"], p_conv["b_pw2"], p_ln)
    return out.reshape(B, T, D)


def squeezeformer_block(xs, lens, p):
    B, T, D = xs.shape
    xs = attention_subblock(xs, lens, p["attn"], p["norm_attn"])
    xs = ffn_res_ln(xs.reshape(B * T, D), p["ffn1"],
                    p["norm_ffn1"]).reshape(B, T, D)
    xs = conv_subblock(xs, lens, p["conv"], p["norm_conv"])
    xs = ffn_res_ln(xs.reshape(B * T, D), p["ffn2"],
                    p["norm_ffn2"]).reshape(B, T, D)
    return xs


def encoder_forward(xs, x_lens, params):
    xs, x_lens = subsampling_forward(xs, x_lens, params["subsampling"])
    lens = x_lens.astype(jnp.int32)
    for p in params["layers"]:
        xs = squeezeformer_block(xs, lens, p)
    return xs.astype(jnp.float32), x_lens


# ----------------------------------------------------------------------------
# Deterministic synthetic parameters (MXU weights stored in bf16)
# ----------------------------------------------------------------------------
def init_params(key, input_dim, d_model, num_layers, num_filters, sub_kernel,
                num_heads, conv_kernel):
    keys = iter(jax.random.split(key, 1024))

    def w(shape, scale=0.05):
        return jax.random.normal(next(keys), shape, jnp.float32) * scale

    def wm(shape, scale=0.05):                    # MXU weights -> bf16
        return w(shape, scale).astype(jnp.bfloat16)

    feat_sub = input_dim
    for _ in range(2):
        feat_sub = (feat_sub + 2 * (sub_kernel // 2) - sub_kernel) // 2 + 1

    params = {
        "subsampling": {
            "kernel": sub_kernel,
            "conv1_w": w((num_filters, 1, sub_kernel, sub_kernel)),
            "conv1_b": w((num_filters,)),
            "conv2_w": w((num_filters, num_filters, sub_kernel, sub_kernel)),
            "conv2_b": w((num_filters,)),
            "proj_w": wm((num_filters * feat_sub, d_model)),
            "proj_b": w((1, d_model)),
        },
        "layers": [],
    }

    bn_eps = 1e-5
    for _ in range(num_layers):
        bn_gamma = jnp.ones((1, d_model), jnp.float32)
        bn_beta = jnp.zeros((1, d_model), jnp.float32)
        bn_mean = jnp.zeros((1, d_model), jnp.float32)
        bn_var = jnp.ones((1, d_model), jnp.float32)
        bn_scale = bn_gamma / jnp.sqrt(bn_var + bn_eps)
        bn_shift = bn_beta - bn_mean * bn_scale

        def ln():
            return {"gamma": jnp.ones((1, d_model), jnp.float32),
                    "beta": jnp.zeros((1, d_model), jnp.float32)}

        layer = {
            "attn": {
                "num_heads": num_heads,
                "w_qkv": wm((d_model, 3 * d_model)),
                "b_qkv": w((1, 3 * d_model)),
                "wo": wm((d_model, d_model)),
                "bo": w((1, d_model)),
            },
            "norm_attn": ln(),
            "ffn1": {
                "w1": wm((d_model, 4 * d_model)), "b1": w((1, 4 * d_model)),
                "w2": wm((4 * d_model, d_model)), "b2": w((1, d_model)),
            },
            "norm_ffn1": ln(),
            "conv": {
                "w_pw1": wm((d_model, 2 * d_model)),
                "b_pw1": w((1, 2 * d_model)),
                "dw_w": w((conv_kernel, d_model)),
                "dw_b": w((1, d_model)),
                "bn_scale": bn_scale, "bn_shift": bn_shift,
                "w_pw2": wm((d_model, d_model)), "b_pw2": w((1, d_model)),
            },
            "norm_conv": ln(),
            "ffn2": {
                "w1": wm((d_model, 4 * d_model)), "b1": w((1, 4 * d_model)),
                "w2": wm((4 * d_model, d_model)), "b2": w((1, d_model)),
            },
            "norm_ffn2": ln(),
        }
        params["layers"].append(layer)
    return params


# ----------------------------------------------------------------------------
# Main
# ----------------------------------------------------------------------------
if __name__ == "__main__":
    # Small, module-consistent shapes.
    B, T_in, input_dim = 2, 32, 16
    d_model, num_layers = 32, 2
    num_filters, sub_kernel = 8, 3
    num_heads, conv_kernel = 4, 7

    key = jax.random.PRNGKey(0)
    k_x, k_p = jax.random.split(key)

    xs = jax.random.normal(k_x, (B, T_in, input_dim), jnp.float32)
    x_lens = jnp.array([32, 24], jnp.int32)

    params = init_params(k_p, input_dim, d_model, num_layers, num_filters,
                         sub_kernel, num_heads, conv_kernel)

    fwd = jax.jit(functools.partial(encoder_forward, params=params))
    out, out_lens = fwd(xs, x_lens)
    out = jax.block_until_ready(out)
    out_lens = jax.block_until_ready(out_lens)

    assert out.shape == (B, T_in // 4, d_model), out.shape
    assert out_lens.shape == (B,), out_lens.shape
    assert bool(jnp.all(jnp.isfinite(out)))

    print("KERNEL_OK")
</pallas_src>

<mosaic_0001>
module attributes {stable_mosaic.version = 11 : i64} {
  func.func @_qkv_proj_kernel(%arg0: i32, %arg1: memref<16x32xbf16, #tpu.memory_space<vmem>>, %arg2: memref<32x96xbf16, #tpu.memory_space<vmem>>, %arg3: memref<1x96xf32, #tpu.memory_space<vmem>>, %arg4: memref<16x32xbf16, #tpu.memory_space<vmem>>, %arg5: memref<16x32xbf16, #tpu.memory_space<vmem>>, %arg6: memref<16x32xbf16, #tpu.memory_space<vmem>>) attributes {dimension_semantics = [#tpu.dimension_semantics<parallel>], iteration_bounds = array<i64: 1>, scalar_prefetch = 0 : i64, scratch_operands = 0 : i64, tpu.core_type = #tpu.core_type<tc>, window_params = [{transform_indices = @transform_0, window_bounds = array<i64: 16, 32>}, {pipeline_mode = #tpu.pipeline_mode<synchronous>, transform_indices = @transform_1, window_bounds = array<i64: 32, 96>}, {pipeline_mode = #tpu.pipeline_mode<synchronous>, transform_indices = @transform_2, window_bounds = array<i64: 1, 96>}, {transform_indices = @transform_3, window_bounds = array<i64: 16, 32>}, {transform_indices = @transform_4, window_bounds = array<i64: 16, 32>}, {transform_indices = @transform_5, window_bounds = array<i64: 16, 32>}]} {
    %c0 = arith.constant 0 : index
    %c0_0 = arith.constant 0 : index
    %0 = vector.load %arg1[%c0, %c0_0] : memref<16x32xbf16, #tpu.memory_space<vmem>>, vector<16x32xbf16>
    %c0_1 = arith.constant 0 : index
    %c0_2 = arith.constant 0 : index
    %1 = vector.load %arg2[%c0_1, %c0_2] : memref<32x96xbf16, #tpu.memory_space<vmem>>, vector<32x96xbf16>
    %cst = arith.constant dense<0.000000e+00> : vector<16x96xf32>
    %2 = tpu.matmul %0, %1, %cst {dimension_numbers = #tpu.dot_dimension_numbers<[1], [0], [0], [1], [0, 0, 1, 1], [], []>} : vector<16x32xbf16>, vector<32x96xbf16>, vector<16x96xf32> -> vector<16x96xf32>
    %c0_3 = arith.constant 0 : index
    %c0_4 = arith.constant 0 : index
    %3 = vector.load %arg3[%c0_3, %c0_4] : memref<1x96xf32, #tpu.memory_space<vmem>>, vector<1x96xf32>
    %4 = vector.broadcast %3 : vector<1x96xf32> to vector<16x96xf32>
    %5 = arith.addf %2, %4 : vector<16x96xf32>
    %6 = vector.extract_strided_slice %5 {offsets = [0, 0], sizes = [16, 32], strides = [1, 1]} : vector<16x96xf32> to vector<16x32xf32>
    %7 = arith.truncf %6 : vector<16x32xf32> to vector<16x32xbf16>
    %c0_5 = arith.constant 0 : index
    %c0_6 = arith.constant 0 : index
    %8 = vector.load %arg4[%c0_5, %c0_6] : memref<16x32xbf16, #tpu.memory_space<vmem>>, vector<16x32xbf16>
    tpu.vector_store %arg4[%c0_5, %c0_6], %7 {strides = array<i32>} : memref<16x32xbf16, #tpu.memory_space<vmem>>, vector<16x32xbf16>,
    %9 = vector.extract_strided_slice %5 {offsets = [0, 32], sizes = [16, 32], strides = [1, 1]} : vector<16x96xf32> to vector<16x32xf32>
    %10 = arith.truncf %9 : vector<16x32xf32> to vector<16x32xbf16>
    %c0_7 = arith.constant 0 : index
    %c0_8 = arith.constant 0 : index
    %11 = vector.load %arg5[%c0_7, %c0_8] : memref<16x32xbf16, #tpu.memory_space<vmem>>, vector<16x32xbf16>
    tpu.vector_store %arg5[%c0_7, %c0_8], %10 {strides = array<i32>} : memref<16x32xbf16, #tpu.memory_space<vmem>>, vector<16x32xbf16>,
    %12 = vector.extract_strided_slice %5 {offsets = [0, 64], sizes = [16, 32], strides = [1, 1]} : vector<16x96xf32> to vector<16x32xf32>
    %13 = arith.truncf %12 : vector<16x32xf32> to vector<16x32xbf16>
    %c0_9 = arith.constant 0 : index
    %c0_10 = arith.constant 0 : index
    %14 = vector.load %arg6[%c0_9, %c0_10] : memref<16x32xbf16, #tpu.memory_space<vmem>>, vector<16x32xbf16>
    tpu.vector_store %arg6[%c0_9, %c0_10], %13 {strides = array<i32>} : memref<16x32xbf16, #tpu.memory_space<vmem>>, vector<16x32xbf16>,
    return
  }
  func.func @transform_0(%arg0: i32) -> (i32, i32) {
    %c0_i32 = arith.constant 0 : i32
    %c0_i32_0 = arith.constant 0 : i32
    return %arg0, %c0_i32 : i32, i32
  }
  func.func @transform_1(%arg0: i32) -> (i32, i32) {
    %c0_i32 = arith.constant 0 : i32
    %c0_i32_0 = arith.constant 0 : i32
    %c0_i32_1 = arith.constant 0 : i32
    return %c0_i32, %c0_i32_0 : i32, i32
  }
  func.func @transform_2(%arg0: i32) -> (i32, i32) {
    %c0_i32 = arith.constant 0 : i32
    %c0_i32_0 = arith.constant 0 : i32
    %c0_i32_1 = arith.constant 0 : i32
    return %c0_i32, %c0_i32_0 : i32, i32
  }
  func.func @transform_3(%arg0: i32) -> (i32, i32) {
    %c0_i32 = arith.constant 0 : i32
    %c0_i32_0 = arith.constant 0 : i32
    return %arg0, %c0_i32 : i32, i32
  }
  func.func @transform_4(%arg0: i32) -> (i32, i32) {
    %c0_i32 = arith.constant 0 : i32
    %c0_i32_0 = arith.constant 0 : i32
    return %arg0, %c0_i32 : i32, i32
  }
  func.func @transform_5(%arg0: i32) -> (i32, i32) {
    %c0_i32 = arith.constant 0 : i32
    %c0_i32_0 = arith.constant 0 : i32
    return %arg0, %c0_i32 : i32, i32
  }
}

module attributes {stable_mosaic.version = 11 : i64} {
  func.func @_matmul_bias_kernel(%arg0: i32, %arg1: memref<16x32xf32, #tpu.memory_space<vmem>>, %arg2: memref<32x32xbf16, #tpu.memory_space<vmem>>, %arg3: memref<1x32xf32, #tpu.memory_space<vmem>>, %arg4: memref<16x32xbf16, #tpu.memory_space<vmem>>) attributes {dimension_semantics = [#tpu.dimension_semantics<parallel>], iteration_bounds = array<i64: 1>, scalar_prefetch = 0 : i64, scratch_operands = 0 : i64, tpu.core_type = #tpu.core_type<tc>, window_params = [{transform_indices = @transform_0, window_bounds = array<i64: 16, 32>}, {pipeline_mode = #tpu.pipeline_mode<synchronous>, transform_indices = @transform_1, window_bounds = array<i64: 32, 32>}, {pipeline_mode = #tpu.pipeline_mode<synchronous>, transform_indices = @transform_2, window_bounds = array<i64: 1, 32>}, {transform_indices = @transform_3, window_bounds = array<i64: 16, 32>}]} {
    %c0 = arith.constant 0 : index
    %c0_0 = arith.constant 0 : index
    %0 = vector.load %arg1[%c0, %c0_0] : memref<16x32xf32, #tpu.memory_space<vmem>>, vector<16x32xf32>
    %1 = arith.truncf %0 : vector<16x32xf32> to vector<16x32xbf16>
    %c0_1 = arith.constant 0 : index
    %c0_2 = arith.constant 0 : index
    %2 = vector.load %arg2[%c0_1, %c0_2] : memref<32x32xbf16, #tpu.memory_space<vmem>>, vector<32x32xbf16>
    %cst = arith.constant dense<0.000000e+00> : vector<16x32xf32>
    %3 = tpu.matmul %1, %2, %cst {dimension_numbers = #tpu.dot_dimension_numbers<[1], [0], [0], [1], [0, 0, 1, 1], [], []>} : vector<16x32xbf16>, vector<32x32xbf16>, vector<16x32xf32> -> vector<16x32xf32>
    %c0_3 = arith.constant 0 : index
    %c0_4 = arith.constant 0 : index
    %4 = vector.load %arg3[%c0_3, %c0_4] : memref<1x32xf32, #tpu.memory_space<vmem>>, vector<1x32xf32>
    %5 = vector.broadcast %4 : vector<1x32xf32> to vector<16x32xf32>
    %6 = arith.addf %3, %5 : vector<16x32xf32>
    %7 = arith.truncf %6 : vector<16x32xf32> to vector<16x32xbf16>
    %c0_5 = arith.constant 0 : index
    %c0_6 = arith.constant 0 : index
    %8 = vector.load %arg4[%c0_5, %c0_6] : memref<16x32xbf16, #tpu.memory_space<vmem>>, vector<16x32xbf16>
    tpu.vector_store %arg4[%c0_5, %c0_6], %7 {strides = array<i32>} : memref<16x32xbf16, #tpu.memory_space<vmem>>, vector<16x32xbf16>,
    return
  }
  func.func @transform_0(%arg0: i32) -> (i32, i32) {
    %c0_i32 = arith.constant 0 : i32
    %c0_i32_0 = arith.constant 0 : i32
    return %arg0, %c0_i32 : i32, i32
  }
  func.func @transform_1(%arg0: i32) -> (i32, i32) {
    %c0_i32 = arith.constant 0 : i32
    %c0_i32_0 = arith.constant 0 : i32
    %c0_i32_1 = arith.constant 0 : i32
    return %c0_i32, %c0_i32_0 : i32, i32
  }
  func.func @transform_2(%arg0: i32) -> (i32, i32) {
    %c0_i32 = arith.constant 0 : i32
    %c0_i32_0 = arith.constant 0 : i32
    %c0_i32_1 = arith.constant 0 : i32
    return %c0_i32, %c0_i32_0 : i32, i32
  }
  func.func @transform_3(%arg0: i32) -> (i32, i32) {
    %c0_i32 = arith.constant 0 : i32
    %c0_i32_0 = arith.constant 0 : i32
    return %arg0, %c0_i32 : i32, i32
  }
}

module attributes {stable_mosaic.version = 11 : i64} {
  func.func @_flash_mha_kernel(%arg0: i32, %arg1: i32, %arg2: i32, %arg3: i32, %arg4: memref<2xi32, #tpu.memory_space<smem>>, %arg5: memref<1x8x32xbf16, #tpu.memory_space<vmem>>, %arg6: memref<1x8x32xbf16, #tpu.memory_space<vmem>>, %arg7: memref<1x8x32xbf16, #tpu.memory_space<vmem>>, %arg8: memref<1x8x32xbf16, #tpu.memory_space<vmem>>, %arg9: memref<8x4xf32, #tpu.memory_space<vmem>>, %arg10: memref<8x4xf32, #tpu.memory_space<vmem>>, %arg11: memref<8x32xf32, #tpu.memory_space<vmem>>) attributes {dimension_semantics = [#tpu.dimension_semantics<parallel>, #tpu.dimension_semantics<parallel>, #tpu.dimension_semantics<parallel>, #tpu.dimension_semantics<arbitrary>], iteration_bounds = array<i64: 2, 1, 1, 1>, scalar_prefetch = 1 : i64, scratch_operands = 3 : i64, tpu.core_type = #tpu.core_type<tc>, window_params = [{transform_indices = @transform_0, window_bounds = array<i64: 1, 8, 32>}, {transform_indices = @transform_1, window_bounds = array<i64: 1, 8, 32>}, {transform_indices = @transform_2, window_bounds = array<i64: 1, 8, 32>}, {transform_indices = @transform_3, window_bounds = array<i64: 1, 8, 32>}]} {
    %0 = arith.index_cast %arg0 : i32 to index
    %1 = memref.load %arg4[%0] : memref<2xi32, #tpu.memory_space<smem>>
    %c0_i32 = arith.constant 0 : i32
    %2 = arith.cmpi eq, %arg3, %c0_i32 : i32
    %3 = arith.extui %2 : i1 to i32
    %c0_i32_0 = arith.constant 0 : i32
    %4 = arith.cmpi ne, %3, %c0_i32_0 : i32
    scf.if %4 {
      %cst = arith.constant 0xFF800000 : f32
      %14 = vector.broadcast %cst : f32 to vector<8x4xf32>
      %c0 = arith.constant 0 : index
      %c0_5 = arith.constant 0 : index
      %15 = vector.load %arg9[%c0, %c0_5] : memref<8x4xf32, #tpu.memory_space<vmem>>, vector<8x4xf32>
      tpu.vector_store %arg9[%c0, %c0_5], %14 {strides = array<i32>} : memref<8x4xf32, #tpu.memory_space<vmem>>, vector<8x4xf32>,
      %cst_6 = arith.constant 0.000000e+00 : f32
      %16 = vector.broadcast %cst_6 : f32 to vector<8x4xf32>
      %c0_7 = arith.constant 0 : index
      %c0_8 = arith.constant 0 : index
      %17 = vector.load %arg10[%c0_7, %c0_8] : memref<8x4xf32, #tpu.memory_space<vmem>>, vector<8x4xf32>
      tpu.vector_store %arg10[%c0_7, %c0_8], %16 {strides = array<i32>} : memref<8x4xf32, #tpu.memory_space<vmem>>, vector<8x4xf32>,
      %cst_9 = arith.constant 0.000000e+00 : f32
      %18 = vector.broadcast %cst_9 : f32 to vector<8x32xf32>
      %c0_10 = arith.constant 0 : index
      %c0_11 = arith.constant 0 : index
      %19 = vector.load %arg11[%c0_10, %c0_11] : memref<8x32xf32, #tpu.memory_space<vmem>>, vector<8x32xf32>
      tpu.vector_store %arg11[%c0_10, %c0_11], %18 {strides = array<i32>} : memref<8x32xf32, #tpu.memory_space<vmem>>, vector<8x32xf32>,
    } else {
    }
    %c0_i32_1 = arith.constant 0 : i32
    %5 = arith.cmpi eq, %arg3, %c0_i32_1 : i32
    %c8_i32 = arith.constant 8 : i32
    %6 = arith.muli %arg3, %c8_i32 : i32
    %7 = arith.cmpi slt, %6, %1 : i32
    %8 = arith.ori %5, %7 : i1
    %9 = arith.extui %8 : i1 to i32
    %c0_i32_2 = arith.constant 0 : i32
    %10 = arith.cmpi ne, %9, %c0_i32_2 : i32
    scf.if %10 {
      %c0 = arith.constant 0 : index
      %c0_5 = arith.constant 0 : index
      %c0_6 = arith.constant 0 : index
      %14 = vector.load %arg5[%c0, %c0_5, %c0_6] : memref<1x8x32xbf16, #tpu.memory_space<vmem>>, vector<1x8x32xbf16>
      %15 = vector.shape_cast %14 : vector<1x8x32xbf16> to vector<8x32xbf16>
      %c0_7 = arith.constant 0 : index
      %c0_8 = arith.constant 0 : index
      %c0_9 = arith.constant 0 : index
      %16 = vector.load %arg6[%c0_7, %c0_8, %c0_9] : memref<1x8x32xbf16, #tpu.memory_space<vmem>>, vector<1x8x32xbf16>
      %17 = vector.shape_cast %16 : vector<1x8x32xbf16> to vector<8x32xbf16>
      %c8_i32_10 = arith.constant 8 : i32
      %18 = arith.muli %arg3, %c8_i32_10 : i32
      %19 = tpu.iota {dimensions = array<i32: 0>} : vector<8x1xi32>
      %20 = vector.broadcast %18 : i32 to vector<8x1xi32>
      %21 = arith.addi %20, %19 : vector<8x1xi32>
      %22 = vector.broadcast %1 : i32 to vector<8x1xi32>
      %23 = arith.cmpi slt, %21, %22 : vector<8x1xi32>
      %c0_11 = arith.constant 0 : index
      %c0_12 = arith.constant 0 : index
      %c0_13 = arith.constant 0 : index
      %24 = vector.load %arg7[%c0_11, %c0_12, %c0_13] : memref<1x8x32xbf16, #tpu.memory_space<vmem>>, vector<1x8x32xbf16>
      %25 = vector.shape_cast %24 : vector<1x8x32xbf16> to vector<8x32xbf16>
      %c0_i32_14 = arith.constant 0 : i32
      %26 = arith.sitofp %c0_i32_14 : i32 to bf16
      %27 = vector.shape_cast %23 : vector<8x1xi1> to vector<8x1xi1>
      %28 = vector.broadcast %27 : vector<8x1xi1> to vector<8x32xi1>
      %29 = vector.broadcast %26 : bf16 to vector<8x32xbf16>
      %30 = arith.select %28, %25, %29 : vector<8x32xi1>, vector<8x32xbf16>
      %c8_i32_15 = arith.constant 8 : i32
      %31 = arith.muli %arg2, %c8_i32_15 : i32
      %32 = tpu.iota {dimensions = array<i32: 0>} : vector<8x8xi32>
      %33 = vector.broadcast %31 : i32 to vector<8x8xi32>
      %34 = arith.addi %33, %32 : vector<8x8xi32>
      %c8_i32_16 = arith.constant 8 : i32
      %35 = arith.muli %arg3, %c8_i32_16 : i32
      %36 = tpu.iota {dimensions = array<i32: 1>} : vector<8x8xi32>
      %37 = vector.broadcast %35 : i32 to vector<8x8xi32>
      %38 = arith.addi %37, %36 : vector<8x8xi32>
      %39 = vector.broadcast %1 : i32 to vector<8x8xi32>
      %40 = arith.cmpi slt, %34, %39 : vector<8x8xi32>
      %41 = vector.broadcast %1 : i32 to vector<8x8xi32>
      %42 = arith.cmpi slt, %38, %41 : vector<8x8xi32>
      %43 = arith.andi %40, %42 : vector<8x8xi1>
      %44 = vector.extract_strided_slice %15 {offsets = [0, 0], sizes = [8, 8], strides = [1, 1]} : vector<8x32xbf16> to vector<8x8xbf16>
      %45 = vector.extract_strided_slice %17 {offsets = [0, 0], sizes = [8, 8], strides = [1, 1]} : vector<8x32xbf16> to vector<8x8xbf16>
      %cst = arith.constant dense<0.000000e+00> : vector<8x8xf32>
      %46 = tpu.matmul %44, %45, %cst {dimension_numbers = #tpu.dot_dimension_numbers<[1], [1], [0], [0], [0, 0, 1, 0], [], []>} : vector<8x8xbf16>, vector<8x8xbf16>, vector<8x8xf32> -> vector<8x8xf32>
      %cst_17 = arith.constant 0.353553385 : f32
      %47 = vector.broadcast %cst_17 : f32 to vector<8x8xf32>
      %48 = arith.mulf %46, %47 : vector<8x8xf32>
      %cst_18 = arith.constant -1.000000e+09 : f32
      %49 = vector.broadcast %cst_18 : f32 to vector<8x8xf32>
      %50 = arith.select %43, %48, %49 : vector<8x8xi1>, vector<8x8xf32>
      %c0_19 = arith.constant 0 : index
      %c0_20 = arith.constant 0 : index
      %51 = vector.load %arg9[%c0_19, %c0_20] : memref<8x4xf32, #tpu.memory_space<vmem>>, vector<8x1xf32>
      %cst_21 = arith.constant dense<0xFF800000> : vector<8xf32>
      %52 = vector.multi_reduction <maximumf>, %50, %cst_21 [1] : vector<8x8xf32> to vector<8xf32>
      %53 = vector.shape_cast %52 : vector<8xf32> to vector<8x1xf32>
      %54 = arith.maximumf %51, %53 : vector<8x1xf32>
      %55 = arith.subf %51, %54 : vector<8x1xf32>
      %56 = math.exp %55 : vector<8x1xf32>
      %57 = vector.broadcast %54 : vector<8x1xf32> to vector<8x8xf32>
      %58 = arith.subf %50, %57 : vector<8x8xf32>
      %59 = math.exp %58 : vector<8x8xf32>
      %c0_22 = arith.constant 0 : index
      %c0_23 = arith.constant 0 : index
      %60 = vector.load %arg10[%c0_22, %c0_23] : memref<8x4xf32, #tpu.memory_space<vmem>>, vector<8x1xf32>
      %61 = arith.mulf %56, %60 : vector<8x1xf32>
      %cst_24 = arith.constant dense<0.000000e+00> : vector<8xf32>
      %62 = vector.multi_reduction <add>, %59, %cst_24 [1] : vector<8x8xf32> to vector<8xf32>
      %63 = vector.shape_cast %62 : vector<8xf32> to vector<8x1xf32>
      %64 = arith.addf %61, %63 : vector<8x1xf32>
      %c0_25 = arith.constant 0 : index
      %c0_26 = arith.constant 0 : index
      %65 = vector.load %arg10[%c0_25, %c0_26] : memref<8x4xf32, #tpu.memory_space<vmem>>, vector<8x1xf32>
      tpu.vector_store %arg10[%c0_25, %c0_26], %64 {strides = array<i32>} : memref<8x4xf32, #tpu.memory_space<vmem>>, vector<8x1xf32>,
      %c0_27 = arith.constant 0 : index
      %c0_28 = arith.constant 0 : index
      %66 = vector.load %arg11[%c0_27, %c0_28] : memref<8x32xf32, #tpu.memory_space<vmem>>, vector<8x8xf32>
      %67 = vector.broadcast %56 : vector<8x1xf32> to vector<8x8xf32>
      %68 = arith.mulf %67, %66 : vector<8x8xf32>
      %69 = arith.truncf %59 : vector<8x8xf32> to vector<8x8xbf16>
      %70 = vector.extract_strided_slice %30 {offsets = [0, 0], sizes = [8, 8], strides = [1, 1]} : vector<8x32xbf16> to vector<8x8xbf16>
      %cst_29 = arith.constant dense<0.000000e+00> : vector<8x8xf32>
      %71 = tpu.matmul %69, %70, %cst_29 {dimension_numbers = #tpu.dot_dimension_numbers<[1], [0], [0], [1], [0, 0, 1, 1], [], []>} : vector<8x8xbf16>, vector<8x8xbf16>, vector<8x8xf32> -> vector<8x8xf32>
      %72 = arith.addf %68, %71 : vector<8x8xf32>
      %c0_30 = arith.constant 0 : index
      %c0_31 = arith.constant 0 : index
      %73 = vector.load %arg11[%c0_30, %c0_31] : memref<8x32xf32, #tpu.memory_space<vmem>>, vector<8x8xf32>
      tpu.vector_store %arg11[%c0_30, %c0_31], %72 {strides = array<i32>} : memref<8x32xf32, #tpu.memory_space<vmem>>, vector<8x8xf32>,
      %c0_32 = arith.constant 0 : index
      %c0_33 = arith.constant 0 : index
      %74 = vector.load %arg9[%c0_32, %c0_33] : memref<8x4xf32, #tpu.memory_space<vmem>>, vector<8x1xf32>
      tpu.vector_store %arg9[%c0_32, %c0_33], %54 {strides = array<i32>} : memref<8x4xf32, #tpu.memory_space<vmem>>, vector<8x1xf32>,
      %75 = vector.extract_strided_slice %15 {offsets = [0, 8], sizes = [8, 8], strides = [1, 1]} : vector<8x32xbf16> to vector<8x8xbf16>
      %76 = vector.extract_strided_slice %17 {offsets = [0, 8], sizes = [8, 8], strides = [1, 1]} : vector<8x32xbf16> to vector<8x8xbf16>
      %cst_34 = arith.constant dense<0.000000e+00> : vector<8x8xf32>
      %77 = tpu.matmul %75, %76, %cst_34 {dimension_numbers = #tpu.dot_dimension_numbers<[1], [1], [0], [0], [0, 0, 1, 0], [], []>} : vector<8x8xbf16>, vector<8x8xbf16>, vector<8x8xf32> -> vector<8x8xf32>
      %cst_35 = arith.constant 0.353553385 : f32
      %78 = vector.broadcast %cst_35 : f32 to vector<8x8xf32>
      %79 = arith.mulf %77, %78 : vector<8x8xf32>
      %cst_36 = arith.constant -1.000000e+09 : f32
      %80 = vector.broadcast %cst_36 : f32 to vector<8x8xf32>
      %81 = arith.select %43, %79, %80 : vector<8x8xi1>, vector<8x8xf32>
      %c0_37 = arith.constant 0 : index
      %c1 = arith.constant 1 : index
      %82 = vector.load %arg9[%c0_37, %c1] : memref<8x4xf32, #tpu.memory_space<vmem>>, vector<8x1xf32>
      %cst_38 = arith.constant dense<0xFF800000> : vector<8xf32>
      %83 = vector.multi_reduction <maximumf>, %81, %cst_38 [1] : vector<8x8xf32> to vector<8xf32>
      %84 = vector.shape_cast %83 : vector<8xf32> to vector<8x1xf32>
      %85 = arith.maximumf %82, %84 : vector<8x1xf32>
      %86 = arith.subf %82, %85 : vector<8x1xf32>
      %87 = math.exp %86 : vector<8x1xf32>
      %88 = vector.broadcast %85 : vector<8x1xf32> to vector<8x8xf32>
      %89 = arith.subf %81, %88 : vector<8x8xf32>
      %90 = math.exp %89 : vector<8x8xf32>
      %c0_39 = arith.constant 0 : index
      %c1_40 = arith.constant 1 : index
      %91 = vector.load %arg10[%c0_39, %c1_40] : memref<8x4xf32, #tpu.memory_space<vmem>>, vector<8x1xf32>
      %92 = arith.mulf %87, %91 : vector<8x1xf32>
      %cst_41 = arith.constant dense<0.000000e+00> : vector<8xf32>
      %93 = vector.multi_reduction <add>, %90, %cst_41 [1] : vector<8x8xf32> to vector<8xf32>
      %94 = vector.shape_cast %93 : vector<8xf32> to vector<8x1xf32>
      %95 = arith.addf %92, %94 : vector<8x1xf32>
      %c0_42 = arith.constant 0 : index
      %c1_43 = arith.constant 1 : index
      %96 = vector.load %arg10[%c0_42, %c1_43] : memref<8x4xf32, #tpu.memory_space<vmem>>, vector<8x1xf32>
      tpu.vector_store %arg10[%c0_42, %c1_43], %95 {strides = array<i32>} : memref<8x4xf32, #tpu.memory_space<vmem>>, vector<8x1xf32>,
      %c0_44 = arith.constant 0 : index
      %c8 = arith.constant 8 : index
      %97 = vector.load %arg11[%c0_44, %c8] : memref<8x32xf32, #tpu.memory_space<vmem>>, vector<8x8xf32>
      %98 = vector.broadcast %87 : vector<8x1xf32> to vector<8x8xf32>
      %99 = arith.mulf %98, %97 : vector<8x8xf32>
      %100 = arith.truncf %90 : vector<8x8xf32> to vector<8x8xbf16>
      %101 = vector.extract_strided_slice %30 {offsets = [0, 8], sizes = [8, 8], strides = [1, 1]} : vector<8x32xbf16> to vector<8x8xbf16>
      %cst_45 = arith.constant dense<0.000000e+00> : vector<8x8xf32>
      %102 = tpu.matmul %100, %101, %cst_45 {dimension_numbers = #tpu.dot_dimension_numbers<[1], [0], [0], [1], [0, 0, 1, 1], [], []>} : vector<8x8xbf16>, vector<8x8xbf16>, vector<8x8xf32> -> vector<8x8xf32>
      %103 = arith.addf %99, %102 : vector<8x8xf32>
      %c0_46 = arith.constant 0 : index
      %c8_47 = arith.constant 8 : index
      %104 = vector.load %arg11[%c0_46, %c8_47] : memref<8x32xf32, #tpu.memory_space<vmem>>, vector<8x8xf32>
      tpu.vector_store %arg11[%c0_46, %c8_47], %103 {strides = array<i32>} : memref<8x32xf32, #tpu.memory_space<vmem>>, vector<8x8xf32>,
      %c0_48 = arith.constant 0 : index
      %c1_49 = arith.constant 1 : index
      %105 = vector.load %arg9[%c0_48, %c1_49] : memref<8x4xf32, #tpu.memory_space<vmem>>, vector<8x1xf32>
      tpu.vector_store %arg9[%c0_48, %c1_49], %85 {strides = array<i32>} : memref<8x4xf32, #tpu.memory_space<vmem>>, vector<8x1xf32>,
      %106 = vector.extract_strided_slice %15 {offsets = [0, 16], sizes = [8, 8], strides = [1, 1]} : vector<8x32xbf16> to vector<8x8xbf16>
      %107 = vector.extract_strided_slice %17 {offsets = [0, 16], sizes = [8, 8], strides = [1, 1]} : vector<8x32xbf16> to vector<8x8xbf16>
      %cst_50 = arith.constant dense<0.000000e+00> : vector<8x8xf32>
      %108 = tpu.matmul %106, %107, %cst_50 {dimension_numbers = #tpu.dot_dimension_numbers<[1], [1], [0], [0], [0, 0, 1, 0], [], []>} : vector<8x8xbf16>, vector<8x8xbf16>, vector<8x8xf32> -> vector<8x8xf32>
      %cst_51 = arith.constant 0.353553385 : f32
      %109 = vector.broadcast %cst_51 : f32 to vector<8x8xf32>
      %110 = arith.mulf %108, %109 : vector<8x8xf32>
      %cst_52 = arith.constant -1.000000e+09 : f32
      %111 = vector.broadcast %cst_52 : f32 to vector<8x8xf32>
      %112 = arith.select %43, %110, %111 : vector<8x8xi1>, vector<8x8xf32>
      %c0_53 = arith.constant 0 : index
      %c2 = arith.constant 2 : index
      %113 = vector.load %arg9[%c0_53, %c2] : memref<8x4xf32, #tpu.memory_space<vmem>>, vector<8x1xf32>
      %cst_54 = arith.constant dense<0xFF800000> : vector<8xf32>
      %114 = vector.multi_reduction <maximumf>, %112, %cst_54 [1] : vector<8x8xf32> to vector<8xf32>
      %115 = vector.shape_cast %114 : vector<8xf32> to vector<8x1xf32>
      %116 = arith.maximumf %113, %115 : vector<8x1xf32>
      %117 = arith.subf %113, %116 : vector<8x1xf32>
      %118 = math.exp %117 : vector<8x1xf32>
      %119 = vector.broadcast %116 : vector<8x1xf32> to vector<8x8xf32>
      %120 = arith.subf %112, %119 : vector<8x8xf32>
      %121 = math.exp %120 : vector<8x8xf32>
      %c0_55 = arith.constant 0 : index
      %c2_56 = arith.constant 2 : index
      %122 = vector.load %arg10[%c0_55, %c2_56] : memref<8x4xf32, #tpu.memory_space<vmem>>, vector<8x1xf32>
      %123 = arith.mulf %118, %122 : vector<8x1xf32>
      %cst_57 = arith.constant dense<0.000000e+00> : vector<8xf32>
      %124 = vector.multi_reduction <add>, %121, %cst_57 [1] : vector<8x8xf32> to vector<8xf32>
      %125 = vector.shape_cast %124 : vector<8xf32> to vector<8x1xf32>
      %126 = arith.addf %123, %125 : vector<8x1xf32>
      %c0_58 = arith.constant 0 : index
      %c2_59 = arith.constant 2 : index
      %127 = vector.load %arg10[%c0_58, %c2_59] : memref<8x4xf32, #tpu.memory_space<vmem>>, vector<8x1xf32>
      tpu.vector_store %arg10[%c0_58, %c2_59], %126 {strides = array<i32>} : memref<8x4xf32, #tpu.memory_space<vmem>>, vector<8x1xf32>,
      %c0_60 = arith.constant 0 : index
      %c16 = arith.constant 16 : index
      %128 = vector.load %arg11[%c0_60, %c16] : memref<8x32xf32, #tpu.memory_space<vmem>>, vector<8x8xf32>
      %129 = vector.broadcast %118 : vector<8x1xf32> to vector<8x8xf32>
      %130 = arith.mulf %129, %128 : vector<8x8xf32>
      %131 = arith.truncf %121 : vector<8x8xf32> to vector<8x8xbf16>
      %132 = vector.extract_strided_slice %30 {offsets = [0, 16], sizes = [8, 8], strides = [1, 1]} : vector<8x32xbf16> to vector<8x8xbf16>
      %cst_61 = arith.constant dense<0.000000e+00> : vector<8x8xf32>
      %133 = tpu.matmul %131, %132, %cst_61 {dimension_numbers = #tpu.dot_dimension_numbers<[1], [0], [0], [1], [0, 0, 1, 1], [], []>} : vector<8x8xbf16>, vector<8x8xbf16>, vector<8x8xf32> -> vector<8x8xf32>
      %134 = arith.addf %130, %133 : vector<8x8xf32>
      %c0_62 = arith.constant 0 : index
      %c16_63 = arith.constant 16 : index
      %135 = vector.load %arg11[%c0_62, %c16_63] : memref<8x32xf32, #tpu.memory_space<vmem>>, vector<8x8xf32>
      tpu.vector_store %arg11[%c0_62, %c16_63], %134 {strides = array<i32>} : memref<8x32xf32, #tpu.memory_space<vmem>>, vector<8x8xf32>,
      %c0_64 = arith.constant 0 : index
      %c2_65 = arith.constant 2 : index
      %136 = vector.load %arg9[%c0_64, %c2_65] : memref<8x4xf32, #tpu.memory_space<vmem>>, vector<8x1xf32>
      tpu.vector_store %arg9[%c0_64, %c2_65], %116 {strides = array<i32>} : memref<8x4xf32, #tpu.memory_space<vmem>>, vector<8x1xf32>,
      %137 = vector.extract_strided_slice %15 {offsets = [0, 24], sizes = [8, 8], strides = [1, 1]} : vector<8x32xbf16> to vector<8x8xbf16>
      %138 = vector.extract_strided_slice %17 {offsets = [0, 24], sizes = [8, 8], strides = [1, 1]} : vector<8x32xbf16> to vector<8x8xbf16>
      %cst_66 = arith.constant dense<0.000000e+00> : vector<8x8xf32>
      %139 = tpu.matmul %137, %138, %cst_66 {dimension_numbers = #tpu.dot_dimension_numbers<[1], [1], [0], [0], [0, 0, 1, 0], [], []>} : vector<8x8xbf16>, vector<8x8xbf16>, vector<8x8xf32> -> vector<8x8xf32>
      %cst_67 = arith.constant 0.353553385 : f32
      %140 = vector.broadcast %cst_67 : f32 to vector<8x8xf32>
      %141 = arith.mulf %139, %140 : vector<8x8xf32>
      %cst_68 = arith.constant -1.000000e+09 : f32
      %142 = vector.broadcast %cst_68 : f32 to vector<8x8xf32>
      %143 = arith.select %43, %141, %142 : vector<8x8xi1>, vector<8x8xf32>
      %c0_69 = arith.constant 0 : index
      %c3 = arith.constant 3 : index
      %144 = vector.load %arg9[%c0_69, %c3] : memref<8x4xf32, #tpu.memory_space<vmem>>, vector<8x1xf32>
      %cst_70 = arith.constant dense<0xFF800000> : vector<8xf32>
      %145 = vector.multi_reduction <maximumf>, %143, %cst_70 [1] : vector<8x8xf32> to vector<8xf32>
      %146 = vector.shape_cast %145 : vector<8xf32> to vector<8x1xf32>
      %147 = arith.maximumf %144, %146 : vector<8x1xf32>
      %148 = arith.subf %144, %147 : vector<8x1xf32>
      %149 = math.exp %148 : vector<8x1xf32>
      %150 = vector.broadcast %147 : vector<8x1xf32> to vector<8x8xf32>
      %151 = arith.subf %143, %150 : vector<8x8xf32>
      %152 = math.exp %151 : vector<8x8xf32>
      %c0_71 = arith.constant 0 : index
      %c3_72 = arith.constant 3 : index
      %153 = vector.load %arg10[%c0_71, %c3_72] : memref<8x4xf32, #tpu.memory_space<vmem>>, vector<8x1xf32>
      %154 = arith.mulf %149, %153 : vector<8x1xf32>
      %cst_73 = arith.constant dense<0.000000e+00> : vector<8xf32>
      %155 = vector.multi_reduction <add>, %152, %cst_73 [1] : vector<8x8xf32> to vector<8xf32>
      %156 = vector.shape_cast %155 : vector<8xf32> to vector<8x1xf32>
      %157 = arith.addf %154, %156 : vector<8x1xf32>
      %c0_74 = arith.constant 0 : index
      %c3_75 = arith.constant 3 : index
      %158 = vector.load %arg10[%c0_74, %c3_75] : memref<8x4xf32, #tpu.memory_space<vmem>>, vector<8x1xf32>
      tpu.vector_store %arg10[%c0_74, %c3_75], %157 {strides = array<i32>} : memref<8x4xf32, #tpu.memory_space<vmem>>, vector<8x1xf32>,
      %c0_76 = arith.constant 0 : index
      %c24 = arith.constant 24 : index
      %159 = vector.load %arg11[%c0_76, %c24] : memref<8x32xf32, #tpu.memory_space<vmem>>, vector<8x8xf32>
      %160 = vector.broadcast %149 : vector<8x1xf32> to vector<8x8xf32>
      %161 = arith.mulf %160, %159 : vector<8x8xf32>
      %162 = arith.truncf %152 : vector<8x8xf32> to vector<8x8xbf16>
      %163 = vector.extract_strided_slice %30 {offsets = [0, 24], sizes = [8, 8], strides = [1, 1]} : vector<8x32xbf16> to vector<8x8xbf16>
      %cst_77 = arith.constant dense<0.000000e+00> : vector<8x8xf32>
      %164 = tpu.matmul %162, %163, %cst_77 {dimension_numbers = #tpu.dot_dimension_numbers<[1], [0], [0], [1], [0, 0, 1, 1], [], []>} : vector<8x8xbf16>, vector<8x8xbf16>, vector<8x8xf32> -> vector<8x8xf32>
      %165 = arith.addf %161, %164 : vector<8x8xf32>
      %c0_78 = arith.constant 0 : index
      %c24_79 = arith.constant 24 : index
      %166 = vector.load %arg11[%c0_78, %c24_79] : memref<8x32xf32, #tpu.memory_space<vmem>>, vector<8x8xf32>
      tpu.vector_store %arg11[%c0_78, %c24_79], %165 {strides = array<i32>} : memref<8x32xf32, #tpu.memory_space<vmem>>, vector<8x8xf32>,
      %c0_80 = arith.constant 0 : index
      %c3_81 = arith.constant 3 : index
      %167 = vector.load %arg9[%c0_80, %c3_81] : memref<8x4xf32, #tpu.memory_space<vmem>>, vector<8x1xf32>
      tpu.vector_store %arg9[%c0_80, %c3_81], %147 {strides = array<i32>} : memref<8x4xf32, #tpu.memory_space<vmem>>, vector<8x1xf32>,
    } else {
    }
    %c0_i32_3 = arith.constant 0 : i32
    %11 = arith.cmpi eq, %arg3, %c0_i32_3 : i32
    %12 = arith.extui %11 : i1 to i32
    %c0_i32_4 = arith.constant 0 : i32
    %13 = arith.cmpi ne, %12, %c0_i32_4 : i32
    scf.if %13 {
      %c0 = arith.constant 0 : index
      %c0_5 = arith.constant 0 : index
      %14 = vector.load %arg10[%c0, %c0_5] : memref<8x4xf32, #tpu.memory_space<vmem>>, vector<8x1xf32>
      %15 = tpu.reciprocal %14 {approx = true} : vector<8x1xf32> -> vector<8x1xf32>
      %c0_6 = arith.constant 0 : index
      %c0_7 = arith.constant 0 : index
      %16 = vector.load %arg11[%c0_6, %c0_7] : memref<8x32xf32, #tpu.memory_space<vmem>>, vector<8x8xf32>
      %17 = vector.broadcast %15 : vector<8x1xf32> to vector<8x8xf32>
      %18 = arith.mulf %16, %17 : vector<8x8xf32>
      %19 = arith.truncf %18 : vector<8x8xf32> to vector<8x8xbf16>
      %c0_8 = arith.constant 0 : index
      %c0_9 = arith.constant 0 : index
      %c0_10 = arith.constant 0 : index
      %20 = vector.load %arg8[%c0_8, %c0_9, %c0_10] : memref<1x8x32xbf16, #tpu.memory_space<vmem>>, vector<1x8x8xbf16>
      %21 = vector.shape_cast %20 : vector<1x8x8xbf16> to vector<8x8xbf16>
      %22 = vector.shape_cast %19 : vector<8x8xbf16> to vector<1x8x8xbf16>
      tpu.vector_store %arg8[%c0_8, %c0_9, %c0_10], %22 {strides = array<i32>} : memref<1x8x32xbf16, #tpu.memory_space<vmem>>, vector<1x8x8xbf16>,
      %c0_11 = arith.constant 0 : index
      %c1 = arith.constant 1 : index
      %23 = vector.load %arg10[%c0_11, %c1] : memref<8x4xf32, #tpu.memory_space<vmem>>, vector<8x1xf32>
      %24 = tpu.reciprocal %23 {approx = true} : vector<8x1xf32> -> vector<8x1xf32>
      %c0_12 = arith.constant 0 : index
      %c8 = arith.constant 8 : index
      %25 = vector.load %arg11[%c0_12, %c8] : memref<8x32xf32, #tpu.memory_space<vmem>>, vector<8x8xf32>
      %26 = vector.broadcast %24 : vector<8x1xf32> to vector<8x8xf32>
      %27 = arith.mulf %25, %26 : vector<8x8xf32>
      %28 = arith.truncf %27 : vector<8x8xf32> to vector<8x8xbf16>
      %c0_13 = arith.constant 0 : index
      %c0_14 = arith.constant 0 : index
      %c8_15 = arith.constant 8 : index
      %29 = vector.load %arg8[%c0_13, %c0_14, %c8_15] : memref<1x8x32xbf16, #tpu.memory_space<vmem>>, vector<1x8x8xbf16>
      %30 = vector.shape_cast %29 : vector<1x8x8xbf16> to vector<8x8xbf16>
      %31 = vector.shape_cast %28 : vector<8x8xbf16> to vector<1x8x8xbf16>
      tpu.vector_store %arg8[%c0_13, %c0_14, %c8_15], %31 {strides = array<i32>} : memref<1x8x32xbf16, #tpu.memory_space<vmem>>, vector<1x8x8xbf16>,
      %c0_16 = arith.constant 0 : index
      %c2 = arith.constant 2 : index
      %32 = vector.load %arg10[%c0_16, %c2] : memref<8x4xf32, #tpu.memory_space<vmem>>, vector<8x1xf32>
      %33 = tpu.reciprocal %32 {approx = true} : vector<8x1xf32> -> vector<8x1xf32>
      %c0_17 = arith.constant 0 : index
      %c16 = arith.constant 16 : index
      %34 = vector.load %arg11[%c0_17, %c16] : memref<8x32xf32, #tpu.memory_space<vmem>>, vector<8x8xf32>
      %35 = vector.broadcast %33 : vector<8x1xf32> to vector<8x8xf32>
      %36 = arith.mulf %34, %35 : vector<8x8xf32>
      %37 = arith.truncf %36 : vector<8x8xf32> to vector<8x8xbf16>
      %c0_18 = arith.constant 0 : index
      %c0_19 = arith.constant 0 : index
      %c16_20 = arith.constant 16 : index
      %38 = vector.load %arg8[%c0_18, %c0_19, %c16_20] : memref<1x8x32xbf16, #tpu.memory_space<vmem>>, vector<1x8x8xbf16>
      %39 = vector.shape_cast %38 : vector<1x8x8xbf16> to vector<8x8xbf16>
      %40 = vector.shape_cast %37 : vector<8x8xbf16> to vector<1x8x8xbf16>
      tpu.vector_store %arg8[%c0_18, %c0_19, %c16_20], %40 {strides = array<i32>} : memref<1x8x32xbf16, #tpu.memory_space<vmem>>, vector<1x8x8xbf16>,
      %c0_21 = arith.constant 0 : index
      %c3 = arith.constant 3 : index
      %41 = vector.load %arg10[%c0_21, %c3] : memref<8x4xf32, #tpu.memory_space<vmem>>, vector<8x1xf32>
      %42 = tpu.reciprocal %41 {approx = true} : vector<8x1xf32> -> vector<8x1xf32>
      %c0_22 = arith.constant 0 : index
      %c24 = arith.constant 24 : index
      %43 = vector.load %arg11[%c0_22, %c24] : memref<8x32xf32, #tpu.memory_space<vmem>>, vector<8x8xf32>
      %44 = vector.broadcast %42 : vector<8x1xf32> to vector<8x8xf32>
      %45 = arith.mulf %43, %44 : vector<8x8xf32>
      %46 = arith.truncf %45 : vector<8x8xf32> to vector<8x8xbf16>
      %c0_23 = arith.constant 0 : index
      %c0_24 = arith.constant 0 : index
      %c24_25 = arith.constant 24 : index
      %47 = vector.load %arg8[%c0_23, %c0_24, %c24_25] : memref<1x8x32xbf16, #tpu.memory_space<vmem>>, vector<1x8x8xbf16>
      %48 = vector.shape_cast %47 : vector<1x8x8xbf16> to vector<8x8xbf16>
      %49 = vector.shape_cast %46 : vector<8x8xbf16> to vector<1x8x8xbf16>
      tpu.vector_store %arg8[%c0_23, %c0_24, %c24_25], %49 {strides = array<i32>} : memref<1x8x32xbf16, #tpu.memory_space<vmem>>, vector<1x8x8xbf16>,
    } else {
    }
    return
  }
  func.func @transform_0(%arg0: i32, %arg1: i32, %arg2: i32, %arg3: i32, %arg4: memref<2xi32, #tpu.memory_space<smem>>) -> (i32, i32, i32) {
    %c0_i32 = arith.constant 0 : i32
    return %arg0, %arg2, %arg1 : i32, i32, i32
  }
  func.func @transform_1(%arg0: i32, %arg1: i32, %arg2: i32, %arg3: i32, %arg4: memref<2xi32, #tpu.memory_space<smem>>) -> (i32, i32, i32) {
    %c0_i32 = arith.constant 0 : i32
    return %arg0, %arg3, %arg1 : i32, i32, i32
  }
  func.func @transform_2(%arg0: i32, %arg1: i32, %arg2: i32, %arg3: i32, %arg4: memref<2xi32, #tpu.memory_space<smem>>) -> (i32, i32, i32) {
    %c0_i32 = arith.constant 0 : i32
    return %arg0, %arg3, %arg1 : i32, i32, i32
  }
  func.func @transform_3(%arg0: i32, %arg1: i32, %arg2: i32, %arg3: i32, %arg4: memref<2xi32, #tpu.memory_space<smem>>) -> (i32, i32, i32) {
    %c0_i32 = arith.constant 0 : i32
    return %arg0, %arg2, %arg1 : i32, i32, i32
  }
}

module attributes {stable_mosaic.version = 11 : i64} {
  func.func @_proj_res_ln_kernel(%arg0: i32, %arg1: memref<16x32xbf16, #tpu.memory_space<vmem>>, %arg2: memref<16x32xbf16, #tpu.memory_space<vmem>>, %arg3: memref<32x32xbf16, #tpu.memory_space<vmem>>, %arg4: memref<1x32xf32, #tpu.memory_space<vmem>>, %arg5: memref<1x32xf32, #tpu.memory_space<vmem>>, %arg6: memref<1x32xf32, #tpu.memory_space<vmem>>, %arg7: memref<16x32xbf16, #tpu.memory_space<vmem>>) attributes {dimension_semantics = [#tpu.dimension_semantics<parallel>], iteration_bounds = array<i64: 1>, scalar_prefetch = 0 : i64, scratch_operands = 0 : i64, tpu.core_type = #tpu.core_type<tc>, window_params = [{transform_indices = @transform_0, window_bounds = array<i64: 16, 32>}, {transform_indices = @transform_1, window_bounds = array<i64: 16, 32>}, {pipeline_mode = #tpu.pipeline_mode<synchronous>, transform_indices = @transform_2, window_bounds = array<i64: 32, 32>}, {pipeline_mode = #tpu.pipeline_mode<synchronous>, transform_indices = @transform_3, window_bounds = array<i64: 1, 32>}, {pipeline_mode = #tpu.pipeline_mode<synchronous>, transform_indices = @transform_4, window_bounds = array<i64: 1, 32>}, {pipeline_mode = #tpu.pipeline_mode<synchronous>, transform_indices = @transform_5, window_bounds = array<i64: 1, 32>}, {transform_indices = @transform_6, window_bounds = array<i64: 16, 32>}]} {
    %c0 = arith.constant 0 : index
    %c0_0 = arith.constant 0 : index
    %0 = vector.load %arg1[%c0, %c0_0] : memref<16x32xbf16, #tpu.memory_space<vmem>>, vector<16x32xbf16>
    %c0_1 = arith.constant 0 : index
    %c0_2 = arith.constant 0 : index
    %1 = vector.load %arg3[%c0_1, %c0_2] : memref<32x32xbf16, #tpu.memory_space<vmem>>, vector<32x32xbf16>
    %cst = arith.constant dense<0.000000e+00> : vector<16x32xf32>
    %2 = tpu.matmul %0, %1, %cst {dimension_numbers = #tpu.dot_dimension_numbers<[1], [0], [0], [1], [0, 0, 1, 1], [], []>} : vector<16x32xbf16>, vector<32x32xbf16>, vector<16x32xf32> -> vector<16x32xf32>
    %c0_3 = arith.constant 0 : index
    %c0_4 = arith.constant 0 : index
    %3 = vector.load %arg4[%c0_3, %c0_4] : memref<1x32xf32, #tpu.memory_space<vmem>>, vector<1x32xf32>
    %4 = vector.broadcast %3 : vector<1x32xf32> to vector<16x32xf32>
    %5 = arith.addf %2, %4 : vector<16x32xf32>
    %c0_5 = arith.constant 0 : index
    %c0_6 = arith.constant 0 : index
    %6 = vector.load %arg2[%c0_5, %c0_6] : memref<16x32xbf16, #tpu.memory_space<vmem>>, vector<16x32xbf16>
    %7 = arith.extf %6 : vector<16x32xbf16> to vector<16x32xf32>
    %8 = arith.addf %5, %7 : vector<16x32xf32>
    %c0_7 = arith.constant 0 : index
    %c0_8 = arith.constant 0 : index
    %9 = vector.load %arg5[%c0_7, %c0_8] : memref<1x32xf32, #tpu.memory_space<vmem>>, vector<1x32xf32>
    %c0_9 = arith.constant 0 : index
    %c0_10 = arith.constant 0 : index
    %10 = vector.load %arg6[%c0_9, %c0_10] : memref<1x32xf32, #tpu.memory_space<vmem>>, vector<1x32xf32>
    %cst_11 = arith.constant dense<0.000000e+00> : vector<16xf32>
    %11 = vector.multi_reduction <add>, %8, %cst_11 [1] : vector<16x32xf32> to vector<16xf32>
    %12 = vector.shape_cast %11 : vector<16xf32> to vector<16x1xf32>
    %cst_12 = arith.constant 3.200000e+01 : f32
    %13 = vector.broadcast %cst_12 : f32 to vector<16x1xf32>
    %14 = arith.divf %12, %13 : vector<16x1xf32>
    %15 = vector.broadcast %14 : vector<16x1xf32> to vector<16x32xf32>
    %16 = arith.subf %8, %15 : vector<16x32xf32>
    %17 = arith.mulf %16, %16 : vector<16x32xf32>
    %cst_13 = arith.constant dense<0.000000e+00> : vector<16xf32>
    %18 = vector.multi_reduction <add>, %17, %cst_13 [1] : vector<16x32xf32> to vector<16xf32>
    %19 = vector.shape_cast %18 : vector<16xf32> to vector<16x1xf32>
    %cst_14 = arith.constant 3.200000e+01 : f32
    %20 = vector.broadcast %cst_14 : f32 to vector<16x1xf32>
    %21 = arith.divf %19, %20 : vector<16x1xf32>
    %cst_15 = arith.constant 9.99999974E-6 : f32
    %22 = vector.broadcast %cst_15 : f32 to vector<16x1xf32>
    %23 = arith.addf %21, %22 : vector<16x1xf32>
    %24 = math.rsqrt %23 : vector<16x1xf32>
    %25 = vector.broadcast %14 : vector<16x1xf32> to vector<16x32xf32>
    %26 = arith.subf %8, %25 : vector<16x32xf32>
    %27 = vector.broadcast %24 : vector<16x1xf32> to vector<16x32xf32>
    %28 = arith.mulf %26, %27 : vector<16x32xf32>
    %29 = vector.broadcast %9 : vector<1x32xf32> to vector<16x32xf32>
    %30 = arith.mulf %28, %29 : vector<16x32xf32>
    %31 = vector.broadcast %10 : vector<1x32xf32> to vector<16x32xf32>
    %32 = arith.addf %30, %31 : vector<16x32xf32>
    %33 = arith.truncf %32 : vector<16x32xf32> to vector<16x32xbf16>
    %c0_16 = arith.constant 0 : index
    %c0_17 = arith.constant 0 : index
    %34 = vector.load %arg7[%c0_16, %c0_17] : memref<16x32xbf16, #tpu.memory_space<vmem>>, vector<16x32xbf16>
    tpu.vector_store %arg7[%c0_16, %c0_17], %33 {strides = array<i32>} : memref<16x32xbf16, #tpu.memory_space<vmem>>, vector<16x32xbf16>,
    return
  }
  func.func @transform_0(%arg0: i32) -> (i32, i32) {
    %c0_i32 = arith.constant 0 : i32
    %c0_i32_0 = arith.constant 0 : i32
    return %arg0, %c0_i32 : i32, i32
  }
  func.func @transform_1(%arg0: i32) -> (i32, i32) {
    %c0_i32 = arith.constant 0 : i32
    %c0_i32_0 = arith.constant 0 : i32
    return %arg0, %c0_i32 : i32, i32
  }
  func.func @transform_2(%arg0: i32) -> (i32, i32) {
    %c0_i32 = arith.constant 0 : i32
    %c0_i32_0 = arith.constant 0 : i32
    %c0_i32_1 = arith.constant 0 : i32
    return %c0_i32, %c0_i32_0 : i32, i32
  }
  func.func @transform_3(%arg0: i32) -> (i32, i32) {
    %c0_i32 = arith.constant 0 : i32
    %c0_i32_0 = arith.constant 0 : i32
    %c0_i32_1 = arith.constant 0 : i32
    return %c0_i32, %c0_i32_0 : i32, i32
  }
  func.func @transform_4(%arg0: i32) -> (i32, i32) {
    %c0_i32 = arith.constant 0 : i32
    %c0_i32_0 = arith.constant 0 : i32
    %c0_i32_1 = arith.constant 0 : i32
    return %c0_i32, %c0_i32_0 : i32, i32
  }
  func.func @transform_5(%arg0: i32) -> (i32, i32) {
    %c0_i32 = arith.constant 0 : i32
    %c0_i32_0 = arith.constant 0 : i32
    %c0_i32_1 = arith.constant 0 : i32
    return %c0_i32, %c0_i32_0 : i32, i32
  }
  func.func @transform_6(%arg0: i32) -> (i32, i32) {
    %c0_i32 = arith.constant 0 : i32
    %c0_i32_0 = arith.constant 0 : i32
    return %arg0, %c0_i32 : i32, i32
  }
}

module attributes {stable_mosaic.version = 11 : i64} {
  func.func @_ffn_res_ln_kernel(%arg0: i32, %arg1: memref<16x32xbf16, #tpu.memory_space<vmem>>, %arg2: memref<32x128xbf16, #tpu.memory_space<vmem>>, %arg3: memref<1x128xf32, #tpu.memory_space<vmem>>, %arg4: memref<128x32xbf16, #tpu.memory_space<vmem>>, %arg5: memref<1x32xf32, #tpu.memory_space<vmem>>, %arg6: memref<1x32xf32, #tpu.memory_space<vmem>>, %arg7: memref<1x32xf32, #tpu.memory_space<vmem>>, %arg8: memref<16x32xbf16, #tpu.memory_space<vmem>>) attributes {dimension_semantics = [#tpu.dimension_semantics<parallel>], iteration_bounds = array<i64: 1>, scalar_prefetch = 0 : i64, scratch_operands = 0 : i64, tpu.core_type = #tpu.core_type<tc>, window_params = [{transform_indices = @transform_0, window_bounds = array<i64: 16, 32>}, {pipeline_mode = #tpu.pipeline_mode<synchronous>, transform_indices = @transform_1, window_bounds = array<i64: 32, 128>}, {pipeline_mode = #tpu.pipeline_mode<synchronous>, transform_indices = @transform_2, window_bounds = array<i64: 1, 128>}, {pipeline_mode = #tpu.pipeline_mode<synchronous>, transform_indices = @transform_3, window_bounds = array<i64: 128, 32>}, {pipeline_mode = #tpu.pipeline_mode<synchronous>, transform_indices = @transform_4, window_bounds = array<i64: 1, 32>}, {pipeline_mode = #tpu.pipeline_mode<synchronous>, transform_indices = @transform_5, window_bounds = array<i64: 1, 32>}, {pipeline_mode = #tpu.pipeline_mode<synchronous>, transform_indices = @transform_6, window_bounds = array<i64: 1, 32>}, {transform_indices = @transform_7, window_bounds = array<i64: 16, 32>}]} {
    %c0 = arith.constant 0 : index
    %c0_0 = arith.constant 0 : index
    %0 = vector.load %arg1[%c0, %c0_0] : memref<16x32xbf16, #tpu.memory_space<vmem>>, vector<16x32xbf16>
    %c0_1 = arith.constant 0 : index
    %c0_2 = arith.constant 0 : index
    %1 = vector.load %arg2[%c0_1, %c0_2] : memref<32x128xbf16, #tpu.memory_space<vmem>>, vector<32x128xbf16>
    %cst = arith.constant dense<0.000000e+00> : vector<16x128xf32>
    %2 = tpu.matmul %0, %1, %cst {dimension_numbers = #tpu.dot_dimension_numbers<[1], [0], [0], [1], [0, 0, 1, 1], [], []>} : vector<16x32xbf16>, vector<32x128xbf16>, vector<16x128xf32> -> vector<16x128xf32>
    %c0_3 = arith.constant 0 : index
    %c0_4 = arith.constant 0 : index
    %3 = vector.load %arg3[%c0_3, %c0_4] : memref<1x128xf32, #tpu.memory_space<vmem>>, vector<1x128xf32>
    %4 = vector.broadcast %3 : vector<1x128xf32> to vector<16x128xf32>
    %5 = arith.addf %2, %4 : vector<16x128xf32>
    %6 = arith.negf %5 : vector<16x128xf32>
    %7 = math.exp %6 : vector<16x128xf32>
    %cst_5 = arith.constant 1.000000e+00 : f32
    %8 = vector.broadcast %cst_5 : f32 to vector<16x128xf32>
    %9 = arith.addf %8, %7 : vector<16x128xf32>
    %10 = arith.divf %8, %9 : vector<16x128xf32>
    %11 = arith.mulf %5, %10 : vector<16x128xf32>
    %12 = arith.truncf %11 : vector<16x128xf32> to vector<16x128xbf16>
    %c0_6 = arith.constant 0 : index
    %c0_7 = arith.constant 0 : index
    %13 = vector.load %arg4[%c0_6, %c0_7] : memref<128x32xbf16, #tpu.memory_space<vmem>>, vector<128x32xbf16>
    %cst_8 = arith.constant dense<0.000000e+00> : vector<16x32xf32>
    %14 = tpu.matmul %12, %13, %cst_8 {dimension_numbers = #tpu.dot_dimension_numbers<[1], [0], [0], [1], [0, 0, 1, 1], [], []>} : vector<16x128xbf16>, vector<128x32xbf16>, vector<16x32xf32> -> vector<16x32xf32>
    %c0_9 = arith.constant 0 : index
    %c0_10 = arith.constant 0 : index
    %15 = vector.load %arg5[%c0_9, %c0_10] : memref<1x32xf32, #tpu.memory_space<vmem>>, vector<1x32xf32>
    %16 = vector.broadcast %15 : vector<1x32xf32> to vector<16x32xf32>
    %17 = arith.addf %14, %16 : vector<16x32xf32>
    %18 = arith.extf %0 : vector<16x32xbf16> to vector<16x32xf32>
    %19 = arith.addf %17, %18 : vector<16x32xf32>
    %c0_11 = arith.constant 0 : index
    %c0_12 = arith.constant 0 : index
    %20 = vector.load %arg6[%c0_11, %c0_12] : memref<1x32xf32, #tpu.memory_space<vmem>>, vector<1x32xf32>
    %c0_13 = arith.constant 0 : index
    %c0_14 = arith.constant 0 : index
    %21 = vector.load %arg7[%c0_13, %c0_14] : memref<1x32xf32, #tpu.memory_space<vmem>>, vector<1x32xf32>
    %cst_15 = arith.constant dense<0.000000e+00> : vector<16xf32>
    %22 = vector.multi_reduction <add>, %19, %cst_15 [1] : vector<16x32xf32> to vector<16xf32>
    %23 = vector.shape_cast %22 : vector<16xf32> to vector<16x1xf32>
    %cst_16 = arith.constant 3.200000e+01 : f32
    %24 = vector.broadcast %cst_16 : f32 to vector<16x1xf32>
    %25 = arith.divf %23, %24 : vector<16x1xf32>
    %26 = vector.broadcast %25 : vector<16x1xf32> to vector<16x32xf32>
    %27 = arith.subf %19, %26 : vector<16x32xf32>
    %28 = arith.mulf %27, %27 : vector<16x32xf32>
    %cst_17 = arith.constant dense<0.000000e+00> : vector<16xf32>
    %29 = vector.multi_reduction <add>, %28, %cst_17 [1] : vector<16x32xf32> to vector<16xf32>
    %30 = vector.shape_cast %29 : vector<16xf32> to vector<16x1xf32>
    %cst_18 = arith.constant 3.200000e+01 : f32
    %31 = vector.broadcast %cst_18 : f32 to vector<16x1xf32>
    %32 = arith.divf %30, %31 : vector<16x1xf32>
    %cst_19 = arith.constant 9.99999974E-6 : f32
    %33 = vector.broadcast %cst_19 : f32 to vector<16x1xf32>
    %34 = arith.addf %32, %33 : vector<16x1xf32>
    %35 = math.rsqrt %34 : vector<16x1xf32>
    %36 = vector.broadcast %25 : vector<16x1xf32> to vector<16x32xf32>
    %37 = arith.subf %19, %36 : vector<16x32xf32>
    %38 = vector.broadcast %35 : vector<16x1xf32> to vector<16x32xf32>
    %39 = arith.mulf %37, %38 : vector<16x32xf32>
    %40 = vector.broadcast %20 : vector<1x32xf32> to vector<16x32xf32>
    %41 = arith.mulf %39, %40 : vector<16x32xf32>
    %42 = vector.broadcast %21 : vector<1x32xf32> to vector<16x32xf32>
    %43 = arith.addf %41, %42 : vector<16x32xf32>
    %44 = arith.truncf %43 : vector<16x32xf32> to vector<16x32xbf16>
    %c0_20 = arith.constant 0 : index
    %c0_21 = arith.constant 0 : index
    %45 = vector.load %arg8[%c0_20, %c0_21] : memref<16x32xbf16, #tpu.memory_space<vmem>>, vector<16x32xbf16>
    tpu.vector_store %arg8[%c0_20, %c0_21], %44 {strides = array<i32>} : memref<16x32xbf16, #tpu.memory_space<vmem>>, vector<16x32xbf16>,
    return
  }
  func.func @transform_0(%arg0: i32) -> (i32, i32) {
    %c0_i32 = arith.constant 0 : i32
    %c0_i32_0 = arith.constant 0 : i32
    return %arg0, %c0_i32 : i32, i32
  }
  func.func @transform_1(%arg0: i32) -> (i32, i32) {
    %c0_i32 = arith.constant 0 : i32
    %c0_i32_0 = arith.constant 0 : i32
    %c0_i32_1 = arith.constant 0 : i32
    return %c0_i32, %c0_i32_0 : i32, i32
  }
  func.func @transform_2(%arg0: i32) -> (i32, i32) {
    %c0_i32 = arith.constant 0 : i32
    %c0_i32_0 = arith.constant 0 : i32
    %c0_i32_1 = arith.constant 0 : i32
    return %c0_i32, %c0_i32_0 : i32, i32
  }
  func.func @transform_3(%arg0: i32) -> (i32, i32) {
    %c0_i32 = arith.constant 0 : i32
    %c0_i32_0 = arith.constant 0 : i32
    %c0_i32_1 = arith.constant 0 : i32
    return %c0_i32, %c0_i32_0 : i32, i32
  }
  func.func @transform_4(%arg0: i32) -> (i32, i32) {
    %c0_i32 = arith.constant 0 : i32
    %c0_i32_0 = arith.constant 0 : i32
    %c0_i32_1 = arith.constant 0 : i32
    return %c0_i32, %c0_i32_0 : i32, i32
  }
  func.func @transform_5(%arg0: i32) -> (i32, i32) {
    %c0_i32 = arith.constant 0 : i32
    %c0_i32_0 = arith.constant 0 : i32
    %c0_i32_1 = arith.constant 0 : i32
    return %c0_i32, %c0_i32_0 : i32, i32
  }
  func.func @transform_6(%arg0: i32) -> (i32, i32) {
    %c0_i32 = arith.constant 0 : i32
    %c0_i32_0 = arith.constant 0 : i32
    %c0_i32_1 = arith.constant 0 : i32
    return %c0_i32, %c0_i32_0 : i32, i32
  }
  func.func @transform_7(%arg0: i32) -> (i32, i32) {
    %c0_i32 = arith.constant 0 : i32
    %c0_i32_0 = arith.constant 0 : i32
    return %arg0, %c0_i32 : i32, i32
  }
}

module attributes {stable_mosaic.version = 11 : i64} {
  func.func @_pw1_glu_kernel(%arg0: i32, %arg1: i32, %arg2: memref<2xi32, #tpu.memory_space<smem>>, %arg3: memref<1x8x32xbf16, #tpu.memory_space<vmem>>, %arg4: memref<32x64xbf16, #tpu.memory_space<vmem>>, %arg5: memref<1x64xf32, #tpu.memory_space<vmem>>, %arg6: memref<1x8x32xbf16, #tpu.memory_space<vmem>>) attributes {dimension_semantics = [#tpu.dimension_semantics<parallel>, #tpu.dimension_semantics<parallel>], iteration_bounds = array<i64: 2, 1>, scalar_prefetch = 1 : i64, scratch_operands = 0 : i64, tpu.core_type = #tpu.core_type<tc>, window_params = [{transform_indices = @transform_0, window_bounds = array<i64: 1, 8, 32>}, {pipeline_mode = #tpu.pipeline_mode<synchronous>, transform_indices = @transform_1, window_bounds = array<i64: 32, 64>}, {pipeline_mode = #tpu.pipeline_mode<synchronous>, transform_indices = @transform_2, window_bounds = array<i64: 1, 64>}, {transform_indices = @transform_3, window_bounds = array<i64: 1, 8, 32>}]} {
    %0 = arith.index_cast %arg0 : i32 to index
    %1 = memref.load %arg2[%0] : memref<2xi32, #tpu.memory_space<smem>>
    %c0 = arith.constant 0 : index
    %c0_0 = arith.constant 0 : index
    %c0_1 = arith.constant 0 : index
    %2 = vector.load %arg3[%c0, %c0_0, %c0_1] : memref<1x8x32xbf16, #tpu.memory_space<vmem>>, vector<1x8x32xbf16>
    %3 = vector.shape_cast %2 : vector<1x8x32xbf16> to vector<8x32xbf16>
    %c8_i32 = arith.constant 8 : i32
    %4 = arith.muli %arg1, %c8_i32 : i32
    %5 = tpu.iota {dimensions = array<i32: 0>} : vector<8x1xi32>
    %6 = vector.broadcast %4 : i32 to vector<8x1xi32>
    %7 = arith.addi %6, %5 : vector<8x1xi32>
    %8 = vector.broadcast %1 : i32 to vector<8x1xi32>
    %9 = arith.cmpi slt, %7, %8 : vector<8x1xi32>
    %c0_i32 = arith.constant 0 : i32
    %10 = arith.sitofp %c0_i32 : i32 to bf16
    %11 = vector.shape_cast %9 : vector<8x1xi1> to vector<8x1xi1>
    %12 = vector.broadcast %11 : vector<8x1xi1> to vector<8x32xi1>
    %13 = vector.broadcast %10 : bf16 to vector<8x32xbf16>
    %14 = arith.select %12, %3, %13 : vector<8x32xi1>, vector<8x32xbf16>
    %c0_2 = arith.constant 0 : index
    %c0_3 = arith.constant 0 : index
    %15 = vector.load %arg4[%c0_2, %c0_3] : memref<32x64xbf16, #tpu.memory_space<vmem>>, vector<32x64xbf16>
    %cst = arith.constant dense<0.000000e+00> : vector<8x64xf32>
    %16 = tpu.matmul %14, %15, %cst {dimension_numbers = #tpu.dot_dimension_numbers<[1], [0], [0], [1], [0, 0, 1, 1], [], []>} : vector<8x32xbf16>, vector<32x64xbf16>, vector<8x64xf32> -> vector<8x64xf32>
    %c0_4 = arith.constant 0 : index
    %c0_5 = arith.constant 0 : index
    %17 = vector.load %arg5[%c0_4, %c0_5] : memref<1x64xf32, #tpu.memory_space<vmem>>, vector<1x64xf32>
    %18 = vector.broadcast %17 : vector<1x64xf32> to vector<8x64xf32>
    %19 = arith.addf %16, %18 : vector<8x64xf32>
    %20 = vector.extract_strided_slice %19 {offsets = [0, 0], sizes = [8, 32], strides = [1, 1]} : vector<8x64xf32> to vector<8x32xf32>
    %21 = vector.extract_strided_slice %19 {offsets = [0, 32], sizes = [8, 32], strides = [1, 1]} : vector<8x64xf32> to vector<8x32xf32>
    %22 = arith.negf %21 : vector<8x32xf32>
    %23 = math.exp %22 : vector<8x32xf32>
    %cst_6 = arith.constant 1.000000e+00 : f32
    %24 = vector.broadcast %cst_6 : f32 to vector<8x32xf32>
    %25 = arith.addf %24, %23 : vector<8x32xf32>
    %26 = arith.divf %24, %25 : vector<8x32xf32>
    %27 = arith.mulf %20, %26 : vector<8x32xf32>
    %28 = arith.truncf %27 : vector<8x32xf32> to vector<8x32xbf16>
    %c0_7 = arith.constant 0 : index
    %c0_8 = arith.constant 0 : index
    %c0_9 = arith.constant 0 : index
    %29 = vector.load %arg6[%c0_7, %c0_8, %c0_9] : memref<1x8x32xbf16, #tpu.memory_space<vmem>>, vector<1x8x32xbf16>
    %30 = vector.shape_cast %29 : vector<1x8x32xbf16> to vector<8x32xbf16>
    %31 = vector.shape_cast %28 : vector<8x32xbf16> to vector<1x8x32xbf16>
    tpu.vector_store %arg6[%c0_7, %c0_8, %c0_9], %31 {strides = array<i32>} : memref<1x8x32xbf16, #tpu.memory_space<vmem>>, vector<1x8x32xbf16>,
    return
  }
  func.func @transform_0(%arg0: i32, %arg1: i32, %arg2: memref<2xi32, #tpu.memory_space<smem>>) -> (i32, i32, i32) {
    %c0_i32 = arith.constant 0 : i32
    %c0_i32_0 = arith.constant 0 : i32
    return %arg0, %arg1, %c0_i32 : i32, i32, i32
  }
  func.func @transform_1(%arg0: i32, %arg1: i32, %arg2: memref<2xi32, #tpu.memory_space<smem>>) -> (i32, i32) {
    %c0_i32 = arith.constant 0 : i32
    %c0_i32_0 = arith.constant 0 : i32
    %c0_i32_1 = arith.constant 0 : i32
    return %c0_i32, %c0_i32_0 : i32, i32
  }
  func.func @transform_2(%arg0: i32, %arg1: i32, %arg2: memref<2xi32, #tpu.memory_space<smem>>) -> (i32, i32) {
    %c0_i32 = arith.constant 0 : i32
    %c0_i32_0 = arith.constant 0 : i32
    %c0_i32_1 = arith.constant 0 : i32
    return %c0_i32, %c0_i32_0 : i32, i32
  }
  func.func @transform_3(%arg0: i32, %arg1: i32, %arg2: memref<2xi32, #tpu.memory_space<smem>>) -> (i32, i32, i32) {
    %c0_i32 = arith.constant 0 : i32
    %c0_i32_0 = arith.constant 0 : i32
    return %arg0, %arg1, %c0_i32 : i32, i32, i32
  }
}

module attributes {stable_mosaic.version = 11 : i64} {
  func.func @_dwconv_bn_swish_kernel(%arg0: i32, %arg1: memref<1x8x32xbf16, #tpu.memory_space<vmem>>, %arg2: memref<7x32xf32, #tpu.memory_space<vmem>>, %arg3: memref<1x32xf32, #tpu.memory_space<vmem>>, %arg4: memref<1x32xf32, #tpu.memory_space<vmem>>, %arg5: memref<1x32xf32, #tpu.memory_space<vmem>>, %arg6: memref<1x8x32xbf16, #tpu.memory_space<vmem>>) attributes {dimension_semantics = [#tpu.dimension_semantics<parallel>], iteration_bounds = array<i64: 2>, scalar_prefetch = 0 : i64, scratch_operands = 0 : i64, tpu.core_type = #tpu.core_type<tc>, window_params = [{transform_indices = @transform_0, window_bounds = array<i64: 1, 8, 32>}, {pipeline_mode = #tpu.pipeline_mode<synchronous>, transform_indices = @transform_1, window_bounds = array<i64: 7, 32>}, {pipeline_mode = #tpu.pipeline_mode<synchronous>, transform_indices = @transform_2, window_bounds = array<i64: 1, 32>}, {pipeline_mode = #tpu.pipeline_mode<synchronous>, transform_indices = @transform_3, window_bounds = array<i64: 1, 32>}, {pipeline_mode = #tpu.pipeline_mode<synchronous>, transform_indices = @transform_4, window_bounds = array<i64: 1, 32>}, {transform_indices = @transform_5, window_bounds = array<i64: 1, 8, 32>}]} {
    %c0 = arith.constant 0 : index
    %c0_0 = arith.constant 0 : index
    %c0_1 = arith.constant 0 : index
    %0 = vector.load %arg1[%c0, %c0_0, %c0_1] : memref<1x8x32xbf16, #tpu.memory_space<vmem>>, vector<1x8x32xbf16>
    %1 = vector.shape_cast %0 : vector<1x8x32xbf16> to vector<8x32xbf16>
    %2 = arith.extf %1 : vector<8x32xbf16> to vector<8x32xf32>
    %3 = tpu.iota {dimensions = array<i32: 0>} : vector<8x1xi32>
    %c0_2 = arith.constant 0 : index
    %c0_3 = arith.constant 0 : index
    %4 = vector.load %arg2[%c0_2, %c0_3] : memref<7x32xf32, #tpu.memory_space<vmem>>, vector<7x32xf32>
    %cst = arith.constant 0.000000e+00 : f32
    %5 = vector.broadcast %cst : f32 to vector<8x32xf32>
    %c3_i32 = arith.constant 3 : i32
    %6 = tpu.dynamic_rotate %2 by %c3_i32 dim 0 : vector<8x32xf32>, i32 -> vector<8x32xf32>
    %c-3_i32 = arith.constant -3 : i32
    %7 = vector.broadcast %c-3_i32 : i32 to vector<8x1xi32>
    %8 = arith.addi %3, %7 : vector<8x1xi32>
    %c0_i32 = arith.constant 0 : i32
    %9 = vector.broadcast %c0_i32 : i32 to vector<8x1xi32>
    %10 = arith.cmpi sge, %8, %9 : vector<8x1xi32>
    %c8_i32 = arith.constant 8 : i32
    %11 = vector.broadcast %c8_i32 : i32 to vector<8x1xi32>
    %12 = arith.cmpi slt, %8, %11 : vector<8x1xi32>
    %13 = arith.andi %10, %12 : vector<8x1xi1>
    %cst_4 = arith.constant 0.000000e+00 : f32
    %14 = vector.shape_cast %13 : vector<8x1xi1> to vector<8x1xi1>
    %15 = vector.broadcast %14 : vector<8x1xi1> to vector<8x32xi1>
    %16 = vector.broadcast %cst_4 : f32 to vector<8x32xf32>
    %17 = arith.select %15, %6, %16 : vector<8x32xi1>, vector<8x32xf32>
    %18 = vector.extract_strided_slice %4 {offsets = [0, 0], sizes = [1, 32], strides = [1, 1]} : vector<7x32xf32> to vector<1x32xf32>
    %19 = vector.shape_cast %18 : vector<1x32xf32> to vector<32xf32>
    %20 = vector.shape_cast %19 : vector<32xf32> to vector<1x32xf32>
    %21 = vector.broadcast %20 : vector<1x32xf32> to vector<8x32xf32>
    %22 = arith.mulf %17, %21 : vector<8x32xf32>
    %23 = arith.addf %5, %22 : vector<8x32xf32>
    %c2_i32 = arith.constant 2 : i32
    %24 = tpu.dynamic_rotate %2 by %c2_i32 dim 0 : vector<8x32xf32>, i32 -> vector<8x32xf32>
    %c-2_i32 = arith.constant -2 : i32
    %25 = vector.broadcast %c-2_i32 : i32 to vector<8x1xi32>
    %26 = arith.addi %3, %25 : vector<8x1xi32>
    %c0_i32_5 = arith.constant 0 : i32
    %27 = vector.broadcast %c0_i32_5 : i32 to vector<8x1xi32>
    %28 = arith.cmpi sge, %26, %27 : vector<8x1xi32>
    %c8_i32_6 = arith.constant 8 : i32
    %29 = vector.broadcast %c8_i32_6 : i32 to vector<8x1xi32>
    %30 = arith.cmpi slt, %26, %29 : vector<8x1xi32>
    %31 = arith.andi %28, %30 : vector<8x1xi1>
    %cst_7 = arith.constant 0.000000e+00 : f32
    %32 = vector.shape_cast %31 : vector<8x1xi1> to vector<8x1xi1>
    %33 = vector.broadcast %32 : vector<8x1xi1> to vector<8x32xi1>
    %34 = vector.broadcast %cst_7 : f32 to vector<8x32xf32>
    %35 = arith.select %33, %24, %34 : vector<8x32xi1>, vector<8x32xf32>
    %36 = vector.extract_strided_slice %4 {offsets = [1, 0], sizes = [1, 32], strides = [1, 1]} : vector<7x32xf32> to vector<1x32xf32>
    %37 = vector.shape_cast %36 : vector<1x32xf32> to vector<32xf32>
    %38 = vector.shape_cast %37 : vector<32xf32> to vector<1x32xf32>
    %39 = vector.broadcast %38 : vector<1x32xf32> to vector<8x32xf32>
    %40 = arith.mulf %35, %39 : vector<8x32xf32>
    %41 = arith.addf %23, %40 : vector<8x32xf32>
    %c1_i32 = arith.constant 1 : i32
    %42 = tpu.dynamic_rotate %2 by %c1_i32 dim 0 : vector<8x32xf32>, i32 -> vector<8x32xf32>
    %c-1_i32 = arith.constant -1 : i32
    %43 = vector.broadcast %c-1_i32 : i32 to vector<8x1xi32>
    %44 = arith.addi %3, %43 : vector<8x1xi32>
    %c0_i32_8 = arith.constant 0 : i32
    %45 = vector.broadcast %c0_i32_8 : i32 to vector<8x1xi32>
    %46 = arith.cmpi sge, %44, %45 : vector<8x1xi32>
    %c8_i32_9 = arith.constant 8 : i32
    %47 = vector.broadcast %c8_i32_9 : i32 to vector<8x1xi32>
    %48 = arith.cmpi slt, %44, %47 : vector<8x1xi32>
    %49 = arith.andi %46, %48 : vector<8x1xi1>
    %cst_10 = arith.constant 0.000000e+00 : f32
    %50 = vector.shape_cast %49 : vector<8x1xi1> to vector<8x1xi1>
    %51 = vector.broadcast %50 : vector<8x1xi1> to vector<8x32xi1>
    %52 = vector.broadcast %cst_10 : f32 to vector<8x32xf32>
    %53 = arith.select %51, %42, %52 : vector<8x32xi1>, vector<8x32xf32>
    %54 = vector.extract_strided_slice %4 {offsets = [2, 0], sizes = [1, 32], strides = [1, 1]} : vector<7x32xf32> to vector<1x32xf32>
    %55 = vector.shape_cast %54 : vector<1x32xf32> to vector<32xf32>
    %56 = vector.shape_cast %55 : vector<32xf32> to vector<1x32xf32>
    %57 = vector.broadcast %56 : vector<1x32xf32> to vector<8x32xf32>
    %58 = arith.mulf %53, %57 : vector<8x32xf32>
    %59 = arith.addf %41, %58 : vector<8x32xf32>
    %60 = vector.extract_strided_slice %4 {offsets = [3, 0], sizes = [1, 32], strides = [1, 1]} : vector<7x32xf32> to vector<1x32xf32>
    %61 = vector.shape_cast %60 : vector<1x32xf32> to vector<32xf32>
    %62 = vector.shape_cast %61 : vector<32xf32> to vector<1x32xf32>
    %63 = vector.broadcast %62 : vector<1x32xf32> to vector<8x32xf32>
    %64 = arith.mulf %2, %63 : vector<8x32xf32>
    %65 = arith.addf %59, %64 : vector<8x32xf32>
    %c7_i32 = arith.constant 7 : i32
    %66 = tpu.dynamic_rotate %2 by %c7_i32 dim 0 : vector<8x32xf32>, i32 -> vector<8x32xf32>
    %c1_i32_11 = arith.constant 1 : i32
    %67 = vector.broadcast %c1_i32_11 : i32 to vector<8x1xi32>
    %68 = arith.addi %3, %67 : vector<8x1xi32>
    %c0_i32_12 = arith.constant 0 : i32
    %69 = vector.broadcast %c0_i32_12 : i32 to vector<8x1xi32>
    %70 = arith.cmpi sge, %68, %69 : vector<8x1xi32>
    %c8_i32_13 = arith.constant 8 : i32
    %71 = vector.broadcast %c8_i32_13 : i32 to vector<8x1xi32>
    %72 = arith.cmpi slt, %68, %71 : vector<8x1xi32>
    %73 = arith.andi %70, %72 : vector<8x1xi1>
    %cst_14 = arith.constant 0.000000e+00 : f32
    %74 = vector.shape_cast %73 : vector<8x1xi1> to vector<8x1xi1>
    %75 = vector.broadcast %74 : vector<8x1xi1> to vector<8x32xi1>
    %76 = vector.broadcast %cst_14 : f32 to vector<8x32xf32>
    %77 = arith.select %75, %66, %76 : vector<8x32xi1>, vector<8x32xf32>
    %78 = vector.extract_strided_slice %4 {offsets = [4, 0], sizes = [1, 32], strides = [1, 1]} : vector<7x32xf32> to vector<1x32xf32>
    %79 = vector.shape_cast %78 : vector<1x32xf32> to vector<32xf32>
    %80 = vector.shape_cast %79 : vector<32xf32> to vector<1x32xf32>
    %81 = vector.broadcast %80 : vector<1x32xf32> to vector<8x32xf32>
    %82 = arith.mulf %77, %81 : vector<8x32xf32>
    %83 = arith.addf %65, %82 : vector<8x32xf32>
    %c6_i32 = arith.constant 6 : i32
    %84 = tpu.dynamic_rotate %2 by %c6_i32 dim 0 : vector<8x32xf32>, i32 -> vector<8x32xf32>
    %c2_i32_15 = arith.constant 2 : i32
    %85 = vector.broadcast %c2_i32_15 : i32 to vector<8x1xi32>
    %86 = arith.addi %3, %85 : vector<8x1xi32>
    %c0_i32_16 = arith.constant 0 : i32
    %87 = vector.broadcast %c0_i32_16 : i32 to vector<8x1xi32>
    %88 = arith.cmpi sge, %86, %87 : vector<8x1xi32>
    %c8_i32_17 = arith.constant 8 : i32
    %89 = vector.broadcast %c8_i32_17 : i32 to vector<8x1xi32>
    %90 = arith.cmpi slt, %86, %89 : vector<8x1xi32>
    %91 = arith.andi %88, %90 : vector<8x1xi1>
    %cst_18 = arith.constant 0.000000e+00 : f32
    %92 = vector.shape_cast %91 : vector<8x1xi1> to vector<8x1xi1>
    %93 = vector.broadcast %92 : vector<8x1xi1> to vector<8x32xi1>
    %94 = vector.broadcast %cst_18 : f32 to vector<8x32xf32>
    %95 = arith.select %93, %84, %94 : vector<8x32xi1>, vector<8x32xf32>
    %96 = vector.extract_strided_slice %4 {offsets = [5, 0], sizes = [1, 32], strides = [1, 1]} : vector<7x32xf32> to vector<1x32xf32>
    %97 = vector.shape_cast %96 : vector<1x32xf32> to vector<32xf32>
    %98 = vector.shape_cast %97 : vector<32xf32> to vector<1x32xf32>
    %99 = vector.broadcast %98 : vector<1x32xf32> to vector<8x32xf32>
    %100 = arith.mulf %95, %99 : vector<8x32xf32>
    %101 = arith.addf %83, %100 : vector<8x32xf32>
    %c5_i32 = arith.constant 5 : i32
    %102 = tpu.dynamic_rotate %2 by %c5_i32 dim 0 : vector<8x32xf32>, i32 -> vector<8x32xf32>
    %c3_i32_19 = arith.constant 3 : i32
    %103 = vector.broadcast %c3_i32_19 : i32 to vector<8x1xi32>
    %104 = arith.addi %3, %103 : vector<8x1xi32>
    %c0_i32_20 = arith.constant 0 : i32
    %105 = vector.broadcast %c0_i32_20 : i32 to vector<8x1xi32>
    %106 = arith.cmpi sge, %104, %105 : vector<8x1xi32>
    %c8_i32_21 = arith.constant 8 : i32
    %107 = vector.broadcast %c8_i32_21 : i32 to vector<8x1xi32>
    %108 = arith.cmpi slt, %104, %107 : vector<8x1xi32>
    %109 = arith.andi %106, %108 : vector<8x1xi1>
    %cst_22 = arith.constant 0.000000e+00 : f32
    %110 = vector.shape_cast %109 : vector<8x1xi1> to vector<8x1xi1>
    %111 = vector.broadcast %110 : vector<8x1xi1> to vector<8x32xi1>
    %112 = vector.broadcast %cst_22 : f32 to vector<8x32xf32>
    %113 = arith.select %111, %102, %112 : vector<8x32xi1>, vector<8x32xf32>
    %114 = vector.extract_strided_slice %4 {offsets = [6, 0], sizes = [1, 32], strides = [1, 1]} : vector<7x32xf32> to vector<1x32xf32>
    %115 = vector.shape_cast %114 : vector<1x32xf32> to vector<32xf32>
    %116 = vector.shape_cast %115 : vector<32xf32> to vector<1x32xf32>
    %117 = vector.broadcast %116 : vector<1x32xf32> to vector<8x32xf32>
    %118 = arith.mulf %113, %117 : vector<8x32xf32>
    %119 = arith.addf %101, %118 : vector<8x32xf32>
    %c0_23 = arith.constant 0 : index
    %c0_24 = arith.constant 0 : index
    %120 = vector.load %arg3[%c0_23, %c0_24] : memref<1x32xf32, #tpu.memory_space<vmem>>, vector<1x32xf32>
    %121 = vector.broadcast %120 : vector<1x32xf32> to vector<8x32xf32>
    %122 = arith.addf %119, %121 : vector<8x32xf32>
    %c0_25 = arith.constant 0 : index
    %c0_26 = arith.constant 0 : index
    %123 = vector.load %arg4[%c0_25, %c0_26] : memref<1x32xf32, #tpu.memory_space<vmem>>, vector<1x32xf32>
    %124 = vector.broadcast %123 : vector<1x32xf32> to vector<8x32xf32>
    %125 = arith.mulf %122, %124 : vector<8x32xf32>
    %c0_27 = arith.constant 0 : index
    %c0_28 = arith.constant 0 : index
    %126 = vector.load %arg5[%c0_27, %c0_28] : memref<1x32xf32, #tpu.memory_space<vmem>>, vector<1x32xf32>
    %127 = vector.broadcast %126 : vector<1x32xf32> to vector<8x32xf32>
    %128 = arith.addf %125, %127 : vector<8x32xf32>
    %129 = arith.negf %128 : vector<8x32xf32>
    %130 = math.exp %129 : vector<8x32xf32>
    %cst_29 = arith.constant 1.000000e+00 : f32
    %131 = vector.broadcast %cst_29 : f32 to vector<8x32xf32>
    %132 = arith.addf %131, %130 : vector<8x32xf32>
    %133 = arith.divf %131, %132 : vector<8x32xf32>
    %134 = arith.mulf %128, %133 : vector<8x32xf32>
    %135 = arith.truncf %134 : vector<8x32xf32> to vector<8x32xbf16>
    %c0_30 = arith.constant 0 : index
    %c0_31 = arith.constant 0 : index
    %c0_32 = arith.constant 0 : index
    %136 = vector.load %arg6[%c0_30, %c0_31, %c0_32] : memref<1x8x32xbf16, #tpu.memory_space<vmem>>, vector<1x8x32xbf16>
    %137 = vector.shape_cast %136 : vector<1x8x32xbf16> to vector<8x32xbf16>
    %138 = vector.shape_cast %135 : vector<8x32xbf16> to vector<1x8x32xbf16>
    tpu.vector_store %arg6[%c0_30, %c0_31, %c0_32], %138 {strides = array<i32>} : memref<1x8x32xbf16, #tpu.memory_space<vmem>>, vector<1x8x32xbf16>,
    return
  }
  func.func @transform_0(%arg0: i32) -> (i32, i32, i32) {
    %c0_i32 = arith.constant 0 : i32
    %c0_i32_0 = arith.constant 0 : i32
    %c0_i32_1 = arith.constant 0 : i32
    return %arg0, %c0_i32, %c0_i32_0 : i32, i32, i32
  }
  func.func @transform_1(%arg0: i32) -> (i32, i32) {
    %c0_i32 = arith.constant 0 : i32
    %c0_i32_0 = arith.constant 0 : i32
    %c0_i32_1 = arith.constant 0 : i32
    return %c0_i32, %c0_i32_0 : i32, i32
  }
  func.func @transform_2(%arg0: i32) -> (i32, i32) {
    %c0_i32 = arith.constant 0 : i32
    %c0_i32_0 = arith.constant 0 : i32
    %c0_i32_1 = arith.constant 0 : i32
    return %c0_i32, %c0_i32_0 : i32, i32
  }
  func.func @transform_3(%arg0: i32) -> (i32, i32) {
    %c0_i32 = arith.constant 0 : i32
    %c0_i32_0 = arith.constant 0 : i32
    %c0_i32_1 = arith.constant 0 : i32
    return %c0_i32, %c0_i32_0 : i32, i32
  }
  func.func @transform_4(%arg0: i32) -> (i32, i32) {
    %c0_i32 = arith.constant 0 : i32
    %c0_i32_0 = arith.constant 0 : i32
    %c0_i32_1 = arith.constant 0 : i32
    return %c0_i32, %c0_i32_0 : i32, i32
  }
  func.func @transform_5(%arg0: i32) -> (i32, i32, i32) {
    %c0_i32 = arith.constant 0 : i32
    %c0_i32_0 = arith.constant 0 : i32
    %c0_i32_1 = arith.constant 0 : i32
    return %arg0, %c0_i32, %c0_i32_0 : i32, i32, i32
  }
}

</mosaic_0001>

<bundles_post_ra>
// kernel: encoder_forward.18
= control target key start
LH: loop header
LB: loop body
LE: loop exit
PB: predicated region body
PF: predicated region fallthrough
CT: control target
= control target key end

     0   :  { %v159_v0 = vmov 0.0   ;;  %vm160_vm0 = vmmov 0   ;;  %vm48_vm1 = vcmask 261120   ;;  %vm101_vm2 = vcmask 257024   ;;  %s162_s27 = smov 96   ;;  %s229_s1 = inlined_call_operand.vmem [shape: bf16[32,96], index: 1, kind: input, shape index: {}]   ;;  %s230_s0 = inlined_call_operand.vmem [shape: bf16[16,32], index: 0, kind: input, shape index: {}]   ;;  %s231_s2 = inlined_call_operand.vmem [shape: f32[1,96], index: 2, kind: input, shape index: {}]   ;;  %s232_s3 = inlined_call_operand.vmem [shape: bf16[16,32], index: 3, kind: output, shape index: {0}]   ;;  %s233_s5 = inlined_call_operand.vmem [shape: bf16[16,32], index: 5, kind: output, shape index: {2}]   ;;  %s234_s4 = inlined_call_operand.vmem [shape: bf16[16,32], index: 4, kind: output, shape index: {1}]  }
   0x1   :  { %144 = vmatprep.subr.bf16.mxu0 %v159_v0  ;;  %v156_v1 = vld [vmem:[%s229_s1] sm:$0xff]   ;;  %148 = vmatprep.mubr.msk.bf16.mxu0 %vm160_vm0, %v159_v0  ;;  %v157_v2 = vld [vmem:[%s229_s1 + $0x8] sm:$0xff]  }
   0x2   :  { %145 = vmatpush3.bf16.msra.mxu0 %v156_v1  ;;  %v158_v3 = vld [vmem:[%s230_s0] sm:$0xff]   ;;  %s161_s0 = smov 64  }
   0x3   :  { %146 = vmatprep.subr.bf16.mxu0 %v159_v0  ;;  %v132_v4 = vld [vmem:[%s231_s2] ss:$0 sm:$0xff] }
   0x6   :  { %147 = vmatpush3.bf16.msra.mxu0 %v157_v2 }
   0x9   :  { %149 = vmatmul.mubr.msk.bf16.vlgmr.msra.gmra.mrb[0].mxu0 %vm48_vm1, %v158_v3 }
  0xdc   :  { %v86_v5 = vpop.f32.mrb[0].mxu0 }
  0xdd   :  { %v87_v6 = vadd.f32 %v132_v4, %v86_v5  ;;  %v150_v7 = vpop.f32.mrb[1].mxu0 }
  0xde   :  { %v89_v8 = vpop.f32.mrb[2].mxu0 }
  0xdf   :  { %v139_v9 = vpack.c.bf16 %v87_v6, %v87_v6  ;;  %v90_v10 = vadd.f32 %v132_v4, %v89_v8  ;;  %v151_v11 = vpop.f32.mrb[3].mxu0 }
  0xe1   :  { %102 = vst.msk [vmem:[%s232_s3] sm:$0xf] %vm101_vm2, %v139_v9  ;;  %v140_v12 = vpack.c.bf16 %v90_v10, %v90_v10  ;;  %112 = vrot.lane.b32.xlu1 %v139_v9, %s161_s0  ;;  %104 = vrot.lane.b32.xlu0 %v139_v9, %s162_s27 }
  0xe3   :  { %103 = vst.msk [vmem:[%s232_s3 + $0x4] sm:$0xf] %vm101_vm2, %v140_v12 }
  0xe5   :  { %114 = vrot.lane.b32.xlu1 %v140_v12, %s161_s0  ;;  %106 = vrot.lane.b32.xlu0 %v140_v12, %s162_s27 }
 0x153   :  { %v113_v13 = vpop.permute.xlu1 %112  ;;  %v105_v14 = vpop.permute.xlu0 %104 }
 0x154   :  { %118 = vst.msk [vmem:[%s233_s5] sm:$0xf] %vm101_vm2, %v113_v13  ;;  %110 = vst.msk [vmem:[%s234_s4] sm:$0xf] %vm101_vm2, %v105_v14 }
 0x157   :  { %v115_v15 = vpop.permute.xlu1 %114  ;;  %v107_v16 = vpop.permute.xlu0 %106 }
 0x158   :  { %119 = vst.msk [vmem:[%s233_s5 + $0x4] sm:$0xf] %vm101_vm2, %v115_v15  ;;  %111 = vst.msk [vmem:[%s234_s4 + $0x4] sm:$0xf] %vm101_vm2, %v107_v16 }

// kernel: encoder_forward.17
= control target key start
LH: loop header
LB: loop body
LE: loop exit
PB: predicated region body
PF: predicated region fallthrough
CT: control target
= control target key end

     0   :  { %v124_v0 = vmov 0.0   ;;  %vm125_vm0 = vmmov 0   ;;  %vm41_vm1 = vcmask 261120   ;;  %vm94_vm2 = vcmask 257024   ;;  %s167_s1 = inlined_call_operand.vmem [shape: bf16[32,32], index: 1, kind: input, shape index: {}]   ;;  %s168_s0 = inlined_call_operand.vmem [shape: f32[16,32], index: 0, kind: input, shape index: {}]   ;;  %s169_s2 = inlined_call_operand.vmem [shape: f32[1,32], index: 2, kind: input, shape index: {}]   ;;  %s170_s3 = inlined_call_operand.vmem [shape: bf16[16,32], index: 3, kind: output, shape index: {}]  }
   0x1   :  { %112 = vmatprep.subr.bf16.mxu0 %v124_v0  ;;  %v122_v1 = vld [vmem:[%s167_s1] sm:$0xff]   ;;  %116 = vmatprep.mubr.msk.bf16.mxu0 %vm125_vm0, %v124_v0  ;;  %v123_v2 = vld [vmem:[%s167_s1 + $0x8] sm:$0xff]  }
   0x2   :  { %113 = vmatpush3.bf16.msra.mxu0 %v122_v1  ;;  %v15_v3 = vld [vmem:[%s168_s0] sm:$0xff]  ;;  %v16_v4 = vld [vmem:[%s168_s0 + $0x8] sm:$0xff] }
   0x3   :  { %114 = vmatprep.subr.bf16.mxu0 %v124_v0  ;;  %v17_v5 = vpack.c.bf16 %v16_v4, %v15_v3  ;;  %v101_v6 = vld [vmem:[%s169_s2] ss:$0 sm:$0xff] }
   0x6   :  { %115 = vmatpush3.bf16.msra.mxu0 %v123_v2 }
   0x9   :  { %117 = vmatmul.mubr.msk.bf16.vlgmr.msra.gmra.mrb[0].mxu0 %vm41_vm1, %v17_v5 }
  0xdc   :  { %v79_v7 = vpop.f32.mrb[0].mxu0 }
  0xdd   :  { %v80_v8 = vadd.f32 %v101_v6, %v79_v7  ;;  %v118_v9 = vpop.f32.mrb[1].mxu0 }
  0xde   :  { %v82_v10 = vpop.f32.mrb[2].mxu0 }
  0xdf   :  { %v107_v11 = vpack.c.bf16 %v80_v8, %v80_v8  ;;  %v83_v12 = vadd.f32 %v101_v6, %v82_v10  ;;  %v119_v13 = vpop.f32.mrb[3].mxu0 }
  0xe1   :  { %95 = vst.msk [vmem:[%s170_s3] sm:$0xf] %vm94_vm2, %v107_v11  ;;  %v108_v14 = vpack.c.bf16 %v83_v12, %v83_v12 }
  0xe3   :  { %96 = vst.msk [vmem:[%s170_s3 + $0x4] sm:$0xf] %vm94_vm2, %v108_v14 }

// kernel: encoder_forward.20
= control target key start
LH: loop header
LB: loop body
LE: loop exit
PB: predicated region body
PF: predicated region fallthrough
CT: control target
= control target key end

     0   :  { %v200_v0 = vmov 0.0   ;;  %vm201_vm0 = vmmov 0   ;;  %vm54_vm1 = vcmask 261120   ;;  %vm158_vm2 = vcmask 257024   ;;  %s269_s2 = inlined_call_operand.vmem [shape: bf16[32,32], index: 2, kind: input, shape index: {}]   ;;  %s270_s0 = inlined_call_operand.vmem [shape: bf16[16,32], index: 0, kind: input, shape index: {}]   ;;  %s271_s1 = inlined_call_operand.vmem [shape: bf16[16,32], index: 1, kind: input, shape index: {}]   ;;  %s272_s3 = inlined_call_operand.vmem [shape: f32[1,32], index: 3, kind: input, shape index: {}]   ;;  %s273_s4 = inlined_call_operand.vmem [shape: f32[1,32], index: 4, kind: input, shape index: {}]   ;;  %s274_s5 = inlined_call_operand.vmem [shape: f32[1,32], index: 5, kind: input, shape index: {}]   ;;  %s275_s6 = inlined_call_operand.vmem [shape: bf16[16,32], index: 6, kind: output, shape index: {}]  }
   0x1   :  { %183 = vmatprep.subr.bf16.mxu0 %v200_v0  ;;  %v193_v1 = vld [vmem:[%s269_s2] sm:$0xff]   ;;  %187 = vmatprep.mubr.msk.bf16.mxu0 %vm201_vm0, %v200_v0  ;;  %v194_v2 = vld [vmem:[%s269_s2 + $0x8] sm:$0xff]  }
   0x2   :  { %184 = vmatpush3.bf16.msra.mxu0 %v193_v1  ;;  %v195_v3 = vld [vmem:[%s270_s0] sm:$0xff]  }
   0x3   :  { %185 = vmatprep.subr.bf16.mxu0 %v200_v0  ;;  %v177_v4 = vld [vmem:[%s271_s1] sm:$0xff]  }
   0x4   :  { %v165_v5 = vld [vmem:[%s272_s3] ss:$0 sm:$0xff]  ;;  %v178_v6 = vunpack.c.l.bf16 %v177_v4  ;;  %v179_v10 = vunpack.c.h.bf16 %v177_v4 }
   0x5   :  { %v170_v35 = vld [vmem:[%s273_s4] ss:$0 sm:$0xff] }
   0x6   :  { %186 = vmatpush3.bf16.msra.mxu0 %v194_v2  ;;  %v171_v37 = vld [vmem:[%s274_s5] ss:$0 sm:$0xff] }
   0x9   :  { %188 = vmatmul.mubr.msk.bf16.vlgmr.msra.gmra.mrb[0].mxu0 %vm54_vm1, %v195_v3 }
  0xdc   :  { %v92_v7 = vpop.f32.mrb[0].mxu0 }
  0xdd   :  { %v93_v8 = vadd.f32 %v165_v5, %v92_v7  ;;  %v189_v9 = vpop.f32.mrb[1].mxu0 }
  0xde   :  { %v95_v11 = vpop.f32.mrb[2].mxu0 }
  0xdf   :  { %v96_v12 = vadd.f32 %v165_v5, %v95_v11  ;;  %v190_v13 = vpop.f32.mrb[3].mxu0  ;;  %v103_v14 = vadd.f32 %v178_v6, %v93_v8 }
  0xe1   :  { %v107_v15 = vsel %vm54_vm1, %v103_v14, 0.0  ;;  %v104_v16 = vadd.f32 %v179_v10, %v96_v12 }
  0xe2   :  { %108 = vadd.xlane.f32.xlu0 %v107_v15 }
  0xe3   :  { %v110_v17 = vsel %vm54_vm1, %v104_v16, 0.0 }
  0xe6   :  { %111 = vadd.xlane.f32.xlu0 %v110_v17 }
 0x16f   :  { %v109_v18 = vpop.xlane.xlu0 %108 }
 0x170   :  { %v114_v19 = vmul.f32 0.03125, %v109_v18 }
 0x172   :  { %v116_v20 = vsub.f32 %v103_v14, %v114_v19 }
 0x173   :  { %v112_v21 = vpop.xlane.xlu0 %111 }
 0x174   :  { %v115_v22 = vmul.f32 0.03125, %v112_v21  ;;  %v118_v23 = vmul.f32 %v116_v20, %v116_v20 }
 0x176   :  { %v117_v24 = vsub.f32 %v104_v16, %v115_v22  ;;  %v120_v25 = vsel %vm54_vm1, %v118_v23, 0.0 }
 0x177   :  { %121 = vadd.xlane.f32.xlu1 %v120_v25 }
 0x178   :  { %v119_v26 = vmul.f32 %v117_v24, %v117_v24 }
 0x17a   :  { %v123_v27 = vsel %vm54_vm1, %v119_v26, 0.0 }
 0x17b   :  { %124 = vadd.xlane.f32.xlu1 %v123_v27 }
 0x204   :  { %v122_v28 = vpop.xlane.xlu1 %121 }
 0x205   :  { %v126_v29 = vmul.f32 0.03125, %v122_v28 }
 0x207   :  { %v128_v30 = vadd.f32 1e-05, %v126_v29 }
 0x208   :  { %v125_v31 = vpop.xlane.xlu1 %124 }
 0x209   :  { %196 = vrsqrt.f32 %v128_v30  ;;  %v127_v32 = vmul.f32 0.03125, %v125_v31 }
 0x20b   :  { %v129_v33 = vadd.f32 1e-05, %v127_v32 }
 0x20d   :  { %198 = vrsqrt.f32 %v129_v33 }
 0x213   :  { %v197_v34 = vpop.eup %196 }
 0x214   :  { %v132_v36 = vmul.f32 %v197_v34, %v116_v20 }
 0x216   :  { %v140_v38 = vmul.f32 %v170_v35, %v132_v36 }
 0x217   :  { %v199_v39 = vpop.eup %198 }
 0x218   :  { %v148_v40 = vadd.f32 %v171_v37, %v140_v38  ;;  %v133_v41 = vmul.f32 %v199_v39, %v117_v24 }
 0x21a   :  { %v174_v42 = vpack.c.bf16 %v148_v40, %v148_v40  ;;  %v141_v43 = vmul.f32 %v170_v35, %v133_v41 }
 0x21c   :  { %159 = vst.msk [vmem:[%s275_s6] sm:$0xf] %vm158_vm2, %v174_v42  ;;  %v149_v44 = vadd.f32 %v171_v37, %v141_v43 }
 0x21e   :  { %v175_v45 = vpack.c.bf16 %v149_v44, %v149_v44 }
 0x220   :  { %160 = vst.msk [vmem:[%s275_s6 + $0x4] sm:$0xf] %vm158_vm2, %v175_v45 }

// kernel: encoder_forward.19
= control target key start
LH: loop header
LB: loop body
LE: loop exit
PB: predicated region body
PF: predicated region fallthrough
CT: control target
= control target key end

     0   :  { %s1540_s0 = inlined_call_operand.vmem [shape: s32[2], index: 0, kind: input, shape index: {}]   ;;  %s1541_s1 = inlined_call_operand.vmem [shape: bf16[2,8,32], index: 1, kind: input, shape index: {}]   ;;  %s1542_s2 = inlined_call_operand.vmem [shape: bf16[2,8,32], index: 2, kind: input, shape index: {}]   ;;  %s1543_s3 = inlined_call_operand.vmem [shape: bf16[2,8,32], index: 3, kind: input, shape index: {}]   ;;  %s1544_s4 = inlined_call_operand.vmem [shape: bf16[2,8,32], index: 4, kind: output, shape index: {}]  }
   0x1   :  { %s9_s17 = sshll.u32 %s1540_s0, 4  ;;  %s10_s17 = int_to_ptr.vmem [resolvable:$true] %s9_s17 }
   0x2   :  { %s1251_s18 = scalar_lea.vmem %s10_s17, 16  ;;  %p1256_p1 = scmp.lt.s32.totalorder %s10_s17, %s10_s17 }
   0x3   :  { %p1252_p0 = scmp.ne.s32.totalorder %s10_s17, %s1251_s18  ;;  %p1257_p2 = scmp.lt.s32.totalorder %s1251_s18, %s1251_s18 }
   0x5   :  { %p1258_p3 = por %p1257_p2, %p1256_p1 }
   0x7   :  { %p1259_p4 = pnand %p1258_p3, %p1252_p0 }
   0x9   :  { %1262 = shalt.err (!%p1259_p4)  }
   0xa   :  { %s1289_s19 = smov [#allocation6]  }
   0xb   :  { %12 = dma.vmem_to_smem %s10_s17, 16, %s1289_s19, [#allocation5] }
   0xc   :  { %1275 = dma.done.wait [#allocation5], 16 }
   0xd   :  { %1276 = vsyncadd [#allocation5], 4294967280 }
   0xe   :  { %14 = sfence }
   0xf   :  { %s1331_s20 = smov 0   ;;  %s1333_s21 = smov 0  }
  0x10   :  { %s1335_s22 = smov 0  }
  0x11 LB: > { %s46_s0 = sadd.s32 1, %s1283_s21  ;;  %p1098_p5 = scmp.ge.s32.totalorder %s1287_s22, 1  ;;  %s1287_s22 = sphi %s1335_s22, %s20_s22   ;;  %s1283_s21 = sphi %s1333_s21, %s1550_s21   ;;  %s1279_s20 = sphi %s1331_s20, %s1549_s20  }
  0x12   : > { %p48_p6 = scmp.ge.s32.totalorder %s46_s0, 2  ;;  %p221_p7 = scmp.lt.s32.totalorder %s1287_s22, 3 }
  0x14   : > { %s1552_s0 = smov (%p48_p6, %s46_s0), 0  ;;  %p222_p8 = pnand %p1098_p5, %p221_p7 }
  0x15   : > { %p275_p9 = scmp.lt.s32.totalorder (!%p222_p8), %s1279_s20, 1  ;;  %v1290_v0 = vmov (!%p222_p8), 0.0   ;;  %vm1291_vm0 = vmmov (!%p222_p8), 0   ;;  %vm354_vm1 = vcmask (!%p222_p8), 64512   ;;  %vm321_vm2 = vcmask (!%p222_p8), 31744   ;;  %s316_s5 = sld [smem:[#allocation6 + %s1279_s20]] (!%p222_p8) }
  0x16   : > { %225 = sbr.rel (%p222_p8) target bundleno = 1437 (0x59d), region = 32  ;;  %1133 = vmatprep.subr.bf16.mxu0 (!%p222_p8), %v1290_v0  ;;  %1135 = vmatprep.mubr.msk.bf16.mxu0 (!%p222_p8), %vm1291_vm0, %v1290_v0  ;;  %v1292_v4 = vmov (!%p222_p8), -inf   ;;  %323 = vst.msk [vmem:[#allocation3] sm:$0xff] (!%p222_p8), %vm321_vm2, %v1290_v0  ;;  %v334_v5 = vlaneseq (!%p222_p8)  ;;  %v1293_v18 = vmov (!%p222_p8), 0   ;;  %s1294_s6 = smov (!%p222_p8), 120   ;;  %vm425_vm6 = vcmask (!%p222_p8), 7168  }
  0x17   : > { %1139 = vmatprep.subr.bf16.mxu1 (!%p222_p8), %v1290_v0  ;;  %1141 = vmatprep.mubr.msk.bf16.mxu1 (!%p222_p8), %vm1291_vm0, %v1290_v0  ;;  %322 = vst.msk [vmem:[#allocation2] sm:$0xff] (!%p222_p8), %vm321_vm2, %v1292_v4  ;;  %s1295_s7 = smov (!%p222_p8), 112   ;;  %s1296_s8 = smov (!%p222_p8), 104   ;;  %vm438_vm8 = vcmask (!%p222_p8), 1043456   ;;  %v1297_v4 = vmov (!%p222_p8), 1   ;;  %vm565_vm9 = vcmask (!%p222_p8), 15368  }
  0x18   : > { %v335_v6 = vshrl.u32 (!%p222_p8), %v334_v5, 7  ;;  %v349_v7 = vand.u32 (!%p222_p8), 127, %v334_v5  ;;  %1219 = vset.pattern.permute.xlu0 (!%p222_p8), %v1293_v18  ;;  %1220 = vset.pattern.permute.xlu1 (!%p222_p8), %v1297_v4  ;;  %v1298_v5 = vmov (!%p222_p8), 2   ;;  %vm324_vm10 = vcmask (!%p222_p8), 261120   ;;  %s1300_s12 = smov (!%p222_p8), 8   ;;  %s1301_s13 = smov (!%p222_p8), 16  }
  0x19   : > { %vm708_vm11 = vcmask (!%p222_p8), 23568   ;;  %325 = vst.msk [vmem:[#allocation4] sm:$0xff] (!%p222_p8), %vm324_vm10, %v1290_v0  ;;  %vm848_vm12 = vcmask (!%p222_p8), 31768   ;;  %s1302_s14 = smov (!%p222_p8), 24   ;;  %vm631_vm13 = vcmask (!%p222_p8), 130112   ;;  %vm771_vm14 = vcmask (!%p222_p8), 195712  }
  0x1a   : > { %vm911_vm15 = vcmask (!%p222_p8), 261312   ;;  %vm951_vm2 = vcmask (!%p222_p8), 191616  }
  0x1b   : > { %v338_v8 = vstv (!%p222_p8), %s316_s5 }
  0x1c   : > { %vm1376_vm3 = vcmp.lt.s32.totalorder (!%p222_p8), %v335_v6, %v338_v8  ;;  %vm352_vm4 = vcmp.lt.s32.totalorder (!%p222_p8), %v349_v7, %v338_v8 }
  0x1d   : > { %s276_s23 = scalar_select %p275_p9, %s1279_s20, 1  ;;  %vm1382_vm5 = vmand %vm1376_vm3, %vm352_vm4 }
  0x1e   : > { %v1396_v21 = vld [vmem:[#allocation2] sm:$0xff]  ;;  %vm343_vm7 = vmpackc.low %vm1376_vm3, %vm1376_vm3  ;;  %vm963_vm3 = vcmask 257216  }
  0x1f   : > { %s1359_s24 = sshll.u32 %s276_s23, 2 }
  0x20   : > { %s294_s27 = scalar_lea.vmem %s1542_s2, %s1359_s24  ;;  %s284_s30 = scalar_lea.vmem %s1541_s1, %s1359_s24 }
  0x21   : > { %v333_v1 = vld [vmem:[%s294_s27] sm:$0xf]  ;;  %s304_s11 = scalar_lea.vmem %s1543_s3, %s1359_s24  ;;  %s314_s17 = scalar_lea.vmem %s1544_s4, %s1359_s24 }
  0x22   : > { %v359_v2 = vsel %vm354_vm1, %v333_v1, 0  ;;  %v332_v3 = vld [vmem:[%s284_s30] sm:$0xf]  ;;  %v1107_v19 = vcombine.low %v333_v1, %v333_v1 }
  0x23   : > { %1134 = vmatpush3.bf16.xpose.msra.mxu0 %v359_v2  ;;  %v1106_v20 = vcombine.low %v332_v3, %v332_v3  ;;  %v340_v25 = vld [vmem:[%s304_s11] sm:$0xf] }
  0x24   : > { %1151 = vmatprep.subr.bf16.mxu0 %v1290_v0  ;;  %493 = vrot.lane.b32.xlu1 %v1107_v19, %s1294_s6  ;;  %v1413_v26 = vsel %vm343_vm7, %v340_v25, 0 }
  0x25   : > { %v440_v27 = vsel %vm438_vm8, %v1413_v26, 0 }
  0x26   : > { %1140 = vmatpush3.bf16.msra.mxu1 %v440_v27 }
  0x27   : > { %1145 = vmatprep.subr.bf16.mxu1 %v1290_v0 }
  0x28   : > { %488 = vrot.lane.b32.xlu1 %v1106_v20, %s1294_s6 }
  0x2a   : > { %1136 = vmatmul.mubr.msk.bf16.vlgmr.msra.gmra.mrb[0].mxu0 %vm354_vm1, %v332_v3 }
  0x2b   : > { %1153 = vmatprep.mubr.msk.bf16.mxu0 %vm1291_vm0, %v1290_v0 }
  0x2c   : > { %636 = vrot.lane.b32.xlu1 %v1107_v19, %s1295_s7 }
  0x30   : > { %634 = vrot.lane.b32.xlu1 %v1106_v20, %s1295_s7 }
  0x34   : > { %776 = vrot.lane.b32.xlu1 %v1107_v19, %s1296_s8 }
  0x38   : > { %774 = vrot.lane.b32.xlu1 %v1106_v20, %s1296_s8 }
  0x96   : > { %v494_v31 = vpop.permute.xlu1 %493 }
  0x97   : > { %v499_v34 = vsel %vm354_vm1, %v494_v31, 0 }
  0x9a   : > { %v489_v32 = vpop.permute.xlu1 %488 }
  0x9e   : > { %v637_v36 = vpop.permute.xlu1 %636 }
  0x9f   : > { %v642_v38 = vsel %vm354_vm1, %v637_v36, 0 }
  0xa2   : > { %v635_v37 = vpop.permute.xlu1 %634 }
  0xa6   : > { %v777_v39 = vpop.permute.xlu1 %776 }
  0xa7   : > { %v782_v40 = vsel %vm354_vm1, %v777_v39, 0 }
  0xaa   : > { %v775_v41 = vpop.permute.xlu1 %774 }
  0xfd   : > { %v395_v10 = vpop.f32.mrb[0].mxu0 }
  0xfe   : > { %v401_v12 = vmul.f32 0.35355338, %v395_v10  ;;  %v1137_v13 = vpop.f32.mrb[1].mxu0  ;;  %v1109_v10 = vcombine.low %v1413_v26, %v1413_v26 }
  0xff   : > { %v398_v14 = vpop.f32.mrb[2].mxu0 }
 0x100   : > { %v1138_v15 = vpop.f32.mrb[3].mxu0  ;;  %v402_v16 = vsel %vm1382_vm5, %v401_v12, -1e+09  ;;  %v1299_v12 = vmov 3  }
 0x101   : > { %v404_v17 = vsel %vm354_vm1, %v402_v16, -inf }
 0x102   : > { %405 = vmax.xlane.f32.xlu0 %v404_v17 }
 0x18f   : > { %v406_v22 = vpop.xlane.xlu0 %405 }
 0x190   : > { %v1399_v23 = vmax.f32 %v1396_v21, %v406_v22 }
 0x192   : > { %v408_v24 = vsub.f32 %v1396_v21, %v1399_v23  ;;  %484 = vst.msk [vmem:[#allocation2] sm:$0xff] %vm425_vm6, %v1399_v23  ;;  %413 = vperm.xlu0 %1219, %v1399_v23  }
 0x194   : > { %v409_v9 = vmul.f32 1.442695, %v408_v24 }
 0x196   : > { %1221 = vset.pattern.permute.xlu0 %v1298_v5 }
 0x199   : > { %v543_v7 = vld [vmem:[#allocation2] sm:$0xff] }
 0x211   : > { %v414_v28 = vpop.permute.xlu0 %413 }
 0x212   : > { %v416_v29 = vsub.f32 %v402_v16, %v414_v28 }
 0x214   : > { %v417_v30 = vmul.f32 1.442695, %v416_v29 }
 0x216   : > { %1233 = vpow2.f32 %v417_v30 }
 0x217   : > { %1235 = vpow2.f32 %v409_v9 }
 0x220   : > { %v1418_v33 = vpop.eup %1233 }
 0x221   : > { %v434_v35 = vpack.c.bf16 %v1418_v33, %v1418_v33  ;;  %v1473_v17 = vpop.eup %1235  ;;  %v421_v23 = vsel %vm354_vm1, %v1418_v33, 0.0 }
 0x223   : > { %1142 = vmatmul.mubr.msk.bf16.vlgmr.msra.gmra.mrb[0].mxu1 %vm354_vm1, %v434_v35 }
 0x224   : > { %1146 = vmatpush3.bf16.xpose.msra.mxu1 %v499_v34  ;;  %1147 = vmatprep.mubr.msk.bf16.mxu1 %vm1291_vm0, %v1290_v0  ;;  %v427_v34 = vld [vmem:[#allocation4] sm:$0xff] }
 0x225   : > { %1157 = vmatprep.subr.bf16.mxu1 %v1290_v0 }
 0x22b   : > { %1148 = vmatmul.mubr.msk.bf16.vlgmr.msra.gmra.mrb[4].mxu1 %vm354_vm1, %v489_v32 }
 0x22c   : > { %1158 = vmatpush3.bf16.xpose.msra.mxu1 %v642_v38  ;;  %1159 = vmatprep.mubr.msk.bf16.mxu1 %vm1291_vm0, %v1290_v0 }
 0x22d   : > { %1169 = vmatprep.subr.bf16.mxu1 %v1290_v0 }
 0x233   : > { %1160 = vmatmul.mubr.msk.bf16.vlgmr.msra.gmra.mrb[8].mxu1 %vm354_vm1, %v635_v37 }
 0x234   : > { %1170 = vmatpush3.bf16.xpose.msra.mxu1 %v782_v40  ;;  %1171 = vmatprep.mubr.msk.bf16.mxu1 %vm1291_vm0, %v1290_v0 }
 0x23b   : > { %1172 = vmatmul.mubr.msk.bf16.vlgmr.msra.gmra.mrb[12].mxu1 %vm354_vm1, %v775_v41 }
 0x2f6   : > { %v1437_v42 = vpop.f32.mrb[0].mxu1 }
 0x2f7   : > { %v1143_v43 = vpop.f32.mrb[1].mxu1 }
 0x2f8   : > { %v479_v44 = vpop.f32.mrb[2].mxu1 }
 0x2f9   : > { %v1144_v45 = vpop.f32.mrb[3].mxu1 }
 0x2fe   : > { %v535_v46 = vpop.f32.mrb[4].mxu1 }
 0x2ff   : > { %v541_v47 = vmul.f32 0.35355338, %v535_v46  ;;  %v1149_v48 = vpop.f32.mrb[5].mxu1 }
 0x300   : > { %v538_v49 = vpop.f32.mrb[6].mxu1 }
 0x301   : > { %v1150_v50 = vpop.f32.mrb[7].mxu1  ;;  %v1441_v51 = vsel %vm1382_vm5, %v541_v47, -1e+09 }
 0x302   : > { %v544_v52 = vsel %vm354_vm1, %v1441_v51, -inf }
 0x303   : > { %545 = vmax.xlane.f32.xlu1 %v544_v52 }
 0x306   : > { %v678_v53 = vpop.f32.mrb[8].mxu1 }
 0x307   : > { %v684_v54 = vmul.f32 0.35355338, %v678_v53  ;;  %v1161_v55 = vpop.f32.mrb[9].mxu1 }
 0x308   : > { %v681_v56 = vpop.f32.mrb[10].mxu1 }
 0x309   : > { %v1162_v57 = vpop.f32.mrb[11].mxu1  ;;  %v1447_v58 = vsel %vm1382_vm5, %v684_v54, -1e+09  ;;  %v419_v56 = vld [vmem:[#allocation3] sm:$0xff] }
 0x30a   : > { %v687_v59 = vsel %vm354_vm1, %v1447_v58, -inf  ;;  %v420_v57 = vmul.f32 %v1473_v17, %v419_v56 }
 0x30b   : > { %688 = vmax.xlane.f32.xlu0 %v687_v59 }
 0x30e   : > { %v818_v60 = vpop.f32.mrb[12].mxu1 }
 0x30f   : > { %v824_v61 = vmul.f32 0.35355338, %v818_v60  ;;  %v1173_v62 = vpop.f32.mrb[13].mxu1 }
 0x310   : > { %v821_v63 = vpop.f32.mrb[14].mxu1 }
 0x311   : > { %v1174_v1 = vpop.f32.mrb[15].mxu1  ;;  %v1453_v2 = vsel %vm1382_vm5, %v824_v61, -1e+09 }
 0x312   : > { %v827_v3 = vsel %vm354_vm1, %v1453_v2, -inf }
 0x313   : > { %828 = vmax.xlane.f32.xlu1 %v827_v3 }
 0x390   : > { %v546_v6 = vpop.xlane.xlu1 %545 }
 0x391   : > { %v547_v8 = vmax.f32 %v543_v7, %v546_v6 }
 0x393   : > { %v548_v11 = vsub.f32 %v543_v7, %v547_v8  ;;  %633 = vst.msk [vmem:[#allocation2] sm:$0xff] %vm565_vm9, %v547_v8  ;;  %553 = vperm.xlu1 %1220, %v547_v8  }
 0x395   : > { %v549_v24 = vmul.f32 1.442695, %v548_v11 }
 0x397   : > { %578 = vrot.lane.b32.xlu1 %v1109_v10, %s1294_s6  ;;  %1237 = vpow2.f32 %v549_v24 }
 0x398   : > { %1222 = vset.pattern.permute.xlu1 %v1299_v12  ;;  %v689_v13 = vpop.xlane.xlu0 %688 }
 0x39a   : > { %v1467_v14 = vld [vmem:[#allocation2] sm:$0xff] }
 0x39b   : > { %v690_v15 = vmax.f32 %v1467_v14, %v689_v13 }
 0x39d   : > { %v691_v16 = vsub.f32 %v1467_v14, %v690_v15  ;;  %773 = vst.msk [vmem:[#allocation2] sm:$0xff] %vm708_vm11, %v690_v15  ;;  %696 = vperm.xlu0 %1221, %v690_v15  }
 0x39f   : > { %v692_v50 = vmul.f32 1.442695, %v691_v16 }
 0x3a0   : > { %v829_v19 = vpop.xlane.xlu1 %828 }
 0x3a1   : > { %1223 = vset.pattern.permute.xlu0 %v1293_v18  ;;  %v1238_v25 = vpop.eup %1237 }
 0x3a2   : > { %430 = vperm.xlu0 %1223, %v1473_v17  }
 0x3a4   : > { %v1477_v20 = vld [vmem:[#allocation2] sm:$0xff] }
 0x3a5   : > { %v1480_v21 = vmax.f32 %v1477_v20, %v829_v19 }
 0x3a6   : > { %1226 = vset.pattern.permute.xlu0 %v1299_v12 }
 0x3a7   : > { %v831_v22 = vsub.f32 %v1477_v20, %v1480_v21  ;;  %913 = vst.msk [vmem:[#allocation2] sm:$0xff] %vm848_vm12, %v1480_v21  ;;  %836 = vperm.xlu1 %1222, %v1480_v21  }
 0x3a9   : > { %v832_v63 = vmul.f32 1.442695, %v831_v22 }
 0x3ab   : > { %718 = vrot.lane.b32.xlu1 %v1109_v10, %s1295_s7 }
 0x3ac   : > { %1224 = vset.pattern.permute.xlu1 %v1297_v4 }
 0x3af   : > { %858 = vrot.lane.b32.xlu1 %v1109_v10, %s1296_s8 }
 0x3d3   : > { %422 = vadd.xlane.f32.xlu1 %v421_v23 }
 0x3e4   : > { %570 = vperm.xlu1 %1224, %v1238_v25  }
 0x3e8   : > { %1225 = vset.pattern.permute.xlu1 %v1298_v5 }
 0x412   : > { %v554_v26 = vpop.permute.xlu1 %553 }
 0x413   : > { %v556_v27 = vsub.f32 %v1441_v51, %v554_v26 }
 0x415   : > { %v557_v28 = vmul.f32 1.442695, %v556_v27 }
 0x416   : > { %v579_v29 = vpop.permute.xlu1 %578 }
 0x417   : > { %1239 = vpow2.f32 %v557_v28  ;;  %v584_v30 = vsel %vm438_vm8, %v579_v29, 0 }
 0x418   : > { %1152 = vmatpush3.bf16.msra.mxu0 %v584_v30 }
 0x419   : > { %1163 = vmatprep.subr.bf16.mxu0 %v1290_v0 }
 0x41c   : > { %v697_v31 = vpop.permute.xlu0 %696 }
 0x41d   : > { %v699_v32 = vsub.f32 %v1447_v58, %v697_v31 }
 0x41f   : > { %v700_v33 = vmul.f32 1.442695, %v699_v32 }
 0x421   : > { %v1240_v35 = vpop.eup %1239  ;;  %1241 = vpow2.f32 %v700_v33  ;;  %v431_v36 = vpop.permute.xlu0 %430 }
 0x422   : > { %v433_v37 = vmul.f32 %v431_v36, %v427_v34  ;;  %v561_v38 = vsel %vm354_vm1, %v1240_v35, 0.0  ;;  %v574_v39 = vpack.c.bf16 %v1240_v35, %v1240_v35 }
 0x423   : > { %562 = vadd.xlane.f32.xlu0 %v561_v38 }
 0x424   : > { %v482_v40 = vadd.f32 %v1437_v42, %v433_v37  ;;  %1154 = vmatmul.mubr.msk.bf16.vlgmr.msra.gmra.mrb[4].mxu0 %vm354_vm1, %v574_v39 }
 0x425   : > { %1165 = vmatprep.mubr.msk.bf16.mxu0 %vm1291_vm0, %v1290_v0 }
 0x426   : > { %483 = vst.msk [vmem:[#allocation4] sm:$0xff] %vm354_vm1, %v482_v40  ;;  %v837_v41 = vpop.permute.xlu1 %836 }
 0x427   : > { %v839_v43 = vsub.f32 %v1453_v2, %v837_v41 }
 0x429   : > { %v840_v44 = vmul.f32 1.442695, %v839_v43 }
 0x42a   : > { %v719_v45 = vpop.permute.xlu1 %718 }
 0x42b   : > { %v1242_v46 = vpop.eup %1241  ;;  %1243 = vpow2.f32 %v840_v44  ;;  %v724_v47 = vsel %vm438_vm8, %v719_v45, 0 }
 0x42c   : > { %1164 = vmatpush3.bf16.msra.mxu0 %v724_v47  ;;  %v704_v48 = vsel %vm354_vm1, %v1242_v46, 0.0  ;;  %v717_v42 = vpack.c.bf16 %v1242_v46, %v1242_v46  ;;  %1245 = vpow2.f32 %v692_v50 }
 0x42d   : > { %705 = vadd.xlane.f32.xlu1 %v704_v48  ;;  %1175 = vmatprep.subr.bf16.mxu0 %v1290_v0  ;;  %1247 = vpow2.f32 %v832_v63  ;;  %v567_v27 = vld [vmem:[#allocation4] sm:$0xff] }
 0x42e   : > { %v859_v49 = vpop.permute.xlu1 %858 }
 0x42f   : > { %1166 = vmatmul.mubr.msk.bf16.vlgmr.msra.gmra.mrb[8].mxu0 %vm354_vm1, %v717_v42  ;;  %v864_v51 = vsel %vm438_vm8, %v859_v49, 0 }
 0x430   : > { %1176 = vmatpush3.bf16.msra.mxu0 %v864_v51  ;;  %1177 = vmatprep.mubr.msk.bf16.mxu0 %vm1291_vm0, %v1290_v0  ;;  %vm927_vm0 = vcmask 60416  }
 0x435   : > { %v1244_v52 = vpop.eup %1243 }
 0x436   : > { %v844_v53 = vsel %vm354_vm1, %v1244_v52, 0.0  ;;  %v857_v54 = vpack.c.bf16 %v1244_v52, %v1244_v52  ;;  %v1246_v55 = vpop.eup %1245 }
 0x437   : > { %845 = vadd.xlane.f32.xlu0 %v844_v53  ;;  %v1248_v7 = vpop.eup %1247 }
 0x438   : > { %1178 = vmatmul.mubr.msk.bf16.vlgmr.msra.gmra.mrb[12].mxu0 %vm354_vm1, %v857_v54  ;;  %vm939_vm1 = vcmask 126016  }
 0x43e   : > { %713 = vperm.xlu1 %1225, %v1246_v55  }
 0x442   : > { %1227 = vset.pattern.permute.xlu1 %v1293_v18 }
 0x460   : > { %v423_v58 = vpop.xlane.xlu1 %422 }
 0x461   : > { %v424_v59 = vadd.f32 %v423_v58, %v420_v57 }
 0x463   : > { %426 = vst.msk [vmem:[#allocation3] sm:$0xff] %vm425_vm6, %v424_v59 }
 0x464   : > { %v571_v1 = vpop.permute.xlu1 %570 }
 0x465   : > { %v573_v28 = vmul.f32 %v571_v1, %v567_v27 }
 0x46a   : > { %v559_v0 = vld [vmem:[#allocation3] sm:$0xff] }
 0x46b   : > { %v560_v60 = vmul.f32 %v1238_v25, %v559_v0 }
 0x4b0   : > { %v563_v61 = vpop.xlane.xlu0 %562 }
 0x4b1   : > { %v564_v62 = vadd.f32 %v563_v61, %v560_v60 }
 0x4b3   : > { %566 = vst.msk [vmem:[#allocation3] sm:$0xff] %vm565_vm9, %v564_v62 }
 0x4ba   : > { %v702_v2 = vld [vmem:[#allocation3] sm:$0xff]  ;;  %v706_v3 = vpop.xlane.xlu1 %705 }
 0x4bb   : > { %v703_v18 = vmul.f32 %v1246_v55, %v702_v2 }
 0x4bd   : > { %v707_v6 = vadd.f32 %v706_v3, %v703_v18 }
 0x4be   : > { %v714_v31 = vpop.permute.xlu1 %713 }
 0x4bf   : > { %709 = vst.msk [vmem:[#allocation3] sm:$0xff] %vm708_vm11, %v707_v6 }
 0x4c4   : > { %v846_v10 = vpop.xlane.xlu0 %845 }
 0x4c6   : > { %v842_v8 = vld [vmem:[#allocation3] sm:$0xff] }
 0x4c7   : > { %v843_v9 = vmul.f32 %v1248_v7, %v842_v8 }
 0x4c9   : > { %v847_v11 = vadd.f32 %v846_v10, %v843_v9 }
 0x4cb   : > { %849 = vst.msk [vmem:[#allocation3] sm:$0xff] %vm848_vm12, %v847_v11 }
 0x4d2   : > { %v917_v13 = vld [vmem:[#allocation3] sm:$0xff] }
 0x4d3   : > { %1249 = vrcp.f32 %v917_v13 }
 0x4dd   : > { %v1250_v14 = vpop.eup %1249 }
 0x4de   : > { %922 = vperm.xlu1 %1227, %v1250_v14  }
 0x4e2   : > { %1229 = vset.pattern.permute.xlu1 %v1298_v5 }
 0x4e3   : > { %946 = vperm.xlu1 %1229, %v1250_v14  }
 0x4e7   : > { %1230 = vset.pattern.permute.xlu1 %v1299_v12 }
 0x4e8   : > { %958 = vperm.xlu1 %1230, %v1250_v14  }
 0x4f7   : > { %v620_v15 = vpop.f32.mrb[4].mxu0 }
 0x4f8   : > { %627 = vrot.lane.b32.xlu0 %v620_v15, %s1300_s12  ;;  %v1155_v16 = vpop.f32.mrb[5].mxu0 }
 0x4f9   : > { %v623_v17 = vpop.f32.mrb[6].mxu0 }
 0x4fa   : > { %v1156_v19 = vpop.f32.mrb[7].mxu0 }
 0x502   : > { %v760_v20 = vpop.f32.mrb[8].mxu0 }
 0x503   : > { %767 = vrot.lane.b32.xlu0 %v760_v20, %s1301_s13  ;;  %v1167_v21 = vpop.f32.mrb[9].mxu0 }
 0x504   : > { %v763_v22 = vpop.f32.mrb[10].mxu0 }
 0x505   : > { %v1168_v23 = vpop.f32.mrb[11].mxu0 }
 0x507   : > { %853 = vperm.xlu0 %1226, %v1248_v7  }
 0x50b   : > { %v900_v24 = vpop.f32.mrb[12].mxu0  ;;  %1228 = vset.pattern.permute.xlu0 %v1297_v4 }
 0x50c   : > { %907 = vrot.lane.b32.xlu0 %v900_v24, %s1302_s14  ;;  %v1179_v5 = vpop.f32.mrb[13].mxu0 }
 0x50d   : > { %v903_v25 = vpop.f32.mrb[14].mxu0 }
 0x50e   : > { %v1180_v26 = vpop.f32.mrb[15].mxu0 }
 0x510   : > { %934 = vperm.xlu0 %1228, %v1250_v14  }
 0x514   : > { %1231 = vset.pattern.permute.xlu0 %v1299_v12 }
 0x55d   : > { %v923_v37 = vpop.permute.xlu1 %922 }
 0x562   : > { %v947_v40 = vpop.permute.xlu1 %946 }
 0x567   : > { %v959_v44 = vpop.permute.xlu1 %958 }
 0x56a   : > { %v628_v29 = vpop.permute.xlu0 %627 }
 0x56b   : > { %v630_v30 = vadd.f32 %v628_v29, %v573_v28 }
 0x56d   : > { %632 = vst.msk [vmem:[#allocation4] sm:$0xff] %vm631_vm13, %v630_v30 }
 0x574   : > { %v710_v32 = vld [vmem:[#allocation4] sm:$0xff] }
 0x575   : > { %v716_v33 = vmul.f32 %v714_v31, %v710_v32  ;;  %v768_v34 = vpop.permute.xlu0 %767 }
 0x577   : > { %v770_v4 = vadd.f32 %v768_v34, %v716_v33 }
 0x579   : > { %772 = vst.msk [vmem:[#allocation4] sm:$0xff] %vm771_vm14, %v770_v4 }
 0x580   : > { %v850_v36 = vld [vmem:[#allocation4] sm:$0xff] }
 0x586   : > { %v854_v35 = vpop.permute.xlu0 %853 }
 0x587   : > { %v856_v38 = vmul.f32 %v854_v35, %v850_v36 }
 0x58a   : > { %v908_v12 = vpop.permute.xlu0 %907 }
 0x58b   : > { %v910_v39 = vadd.f32 %v908_v12, %v856_v38 }
 0x58d   : > { %912 = vst.msk [vmem:[#allocation4] sm:$0xff] %vm911_vm15, %v910_v39 }
 0x58f   : > { %v935_v43 = vpop.permute.xlu0 %934 }
 0x594   : > { %v919_v41 = vld [vmem:[#allocation4] sm:$0xff] }
 0x595   : > { %v925_v45 = vmul.f32 %v923_v37, %v919_v41  ;;  %v949_v46 = vmul.f32 %v947_v40, %v919_v41  ;;  %v937_v47 = vmul.f32 %v935_v43, %v919_v41  ;;  %v961_v48 = vmul.f32 %v959_v44, %v919_v41 }
 0x597   : > { %v926_v42 = vpack.c.bf16 %v925_v45, %v925_v45  ;;  %v938_v49 = vpack.c.bf16 %v937_v47, %v937_v47  ;;  %v950_v50 = vpack.c.bf16 %v949_v46, %v949_v46  ;;  %v962_v51 = vpack.c.bf16 %v961_v48, %v961_v48 }
 0x599   : > { %928 = vst.msk [vmem:[%s314_s17] sm:$0xf] %vm927_vm0, %v926_v42 }
 0x59a   : > { %940 = vst.msk [vmem:[%s314_s17] sm:$0xf] %vm939_vm1, %v938_v49 }
 0x59b   : > { %952 = vst.msk [vmem:[%s314_s17] sm:$0xf] %vm951_vm2, %v950_v50 }
 0x59c   : > { %964 = vst.msk [vmem:[%s314_s17] sm:$0xf] %vm963_vm3, %v962_v51 }
 0x59d PF: > { %s20_s22 = sadd.s32 1, %s1287_s22   ;;  %s1549_s20 = smov %s1283_s21 }
 0x59e   : > { %p17_p10 = scmp.ge.s32.totalorder %s20_s22, 4   ;;  %s1550_s21 = smov %s1552_s0 }
 0x5a0   :  { %19 = sbr.rel (!%p17_p10) target bundleno = 17 (0x11), region = 80 }

// kernel: encoder_forward.21
= control target key start
LH: loop header
LB: loop body
LE: loop exit
PB: predicated region body
PF: predicated region fallthrough
CT: control target
= control target key end

     0   :  { %v381_v0 = vmov 0.0   ;;  %vm382_vm0 = vmmov 0   ;;  %vm57_vm1 = vcmask 261120   ;;  %vm286_vm2 = vcmask 257024   ;;  %s484_s1 = inlined_call_operand.vmem [shape: bf16[32,128], index: 1, kind: input, shape index: {}]   ;;  %s485_s0 = inlined_call_operand.vmem [shape: bf16[16,32], index: 0, kind: input, shape index: {}]   ;;  %s486_s3 = inlined_call_operand.vmem [shape: bf16[128,32], index: 3, kind: input, shape index: {}]   ;;  %s487_s2 = inlined_call_operand.vmem [shape: f32[1,128], index: 2, kind: input, shape index: {}]   ;;  %s488_s4 = inlined_call_operand.vmem [shape: f32[1,32], index: 4, kind: input, shape index: {}]   ;;  %s489_s5 = inlined_call_operand.vmem [shape: f32[1,32], index: 5, kind: input, shape index: {}]   ;;  %s490_s6 = inlined_call_operand.vmem [shape: f32[1,32], index: 6, kind: input, shape index: {}]   ;;  %s491_s7 = inlined_call_operand.vmem [shape: bf16[16,32], index: 7, kind: output, shape index: {}]  }
   0x1   :  { %327 = vmatprep.subr.bf16.mxu0 %v381_v0  ;;  %v357_v1 = vld [vmem:[%s484_s1] sm:$0xff]   ;;  %331 = vmatprep.mubr.msk.bf16.mxu0 %vm382_vm0, %v381_v0  ;;  %v358_v2 = vld [vmem:[%s484_s1 + $0x8] sm:$0xff]   ;;  %v362_v6 = vld [vmem:[%s486_s3 + $0x10] sm:$0xff]  }
   0x2   :  { %335 = vmatprep.subr.bf16.mxu1 %v381_v0  ;;  %351 = vmatprep.mubr.msk.bf16.mxu1 %vm382_vm0, %v381_v0  ;;  %v432_v3 = vld [vmem:[%s485_s0] sm:$0xff]   ;;  %v361_v5 = vld [vmem:[%s486_s3 + $0x8] sm:$0xff]   ;;  %v363_v7 = vld [vmem:[%s486_s3 + $0x18] sm:$0xff]  }
   0x3   :  { %328 = vmatpush3.bf16.msra.mxu0 %v357_v1  ;;  %v360_v4 = vld [vmem:[%s486_s3] sm:$0xff]   ;;  %v365_v9 = vld [vmem:[%s486_s3 + $0x28] sm:$0xff]   ;;  %v366_v10 = vld [vmem:[%s486_s3 + $0x30] sm:$0xff]   ;;  %v229_v31 = vunpack.c.l.bf16 %v432_v3  ;;  %v230_v35 = vunpack.c.h.bf16 %v432_v3 }
   0x4   :  { %329 = vmatprep.subr.bf16.mxu0 %v381_v0  ;;  %336 = vmatpush3.bf16.msra.mxu1 %v360_v4  ;;  %v364_v8 = vld [vmem:[%s486_s3 + $0x20] sm:$0xff]   ;;  %v367_v11 = vld [vmem:[%s486_s3 + $0x38] sm:$0xff]  }
   0x5   :  { %337 = vmatprep.subr.bf16.mxu1 %v381_v0  ;;  %v293_v12 = vld [vmem:[%s487_s2] ss:$0 sm:$0xff] }
   0x6   :  { %v300_v30 = vld [vmem:[%s488_s4] ss:$0 sm:$0xff] }
   0x7   :  { %330 = vmatpush3.bf16.msra.mxu0 %v358_v2  ;;  %v309_v60 = vld [vmem:[%s489_s5] ss:$0 sm:$0xff] }
   0x8   :  { %338 = vmatpush3.bf16.msra.mxu1 %v361_v5  ;;  %v310_v62 = vld [vmem:[%s490_s6] ss:$0 sm:$0xff] }
   0x9   :  { %339 = vmatprep.subr.bf16.mxu1 %v381_v0 }
   0xa   :  { %332 = vmatmul.mubr.msk.bf16.vlgmr.msra.gmra.mrb[0].mxu0 %vm57_vm1, %v432_v3 }
   0xc   :  { %340 = vmatpush3.bf16.msra.mxu1 %v362_v6 }
   0xd   :  { %341 = vmatprep.subr.bf16.mxu1 %v381_v0 }
  0x10   :  { %342 = vmatpush3.bf16.msra.mxu1 %v363_v7 }
  0x11   :  { %343 = vmatprep.subr.bf16.mxu1 %v381_v0 }
  0x14   :  { %344 = vmatpush3.bf16.msra.mxu1 %v364_v8 }
  0x15   :  { %345 = vmatprep.subr.bf16.mxu1 %v381_v0 }
  0x18   :  { %346 = vmatpush3.bf16.msra.mxu1 %v365_v9 }
  0x19   :  { %347 = vmatprep.subr.bf16.mxu1 %v381_v0 }
  0x1c   :  { %348 = vmatpush3.bf16.msra.mxu1 %v366_v10 }
  0x1d   :  { %349 = vmatprep.subr.bf16.mxu1 %v381_v0 }
  0x20   :  { %350 = vmatpush3.bf16.msra.mxu1 %v367_v11 }
  0xdd   :  { %v95_v13 = vpop.f32.mrb[0].mxu0 }
  0xde   :  { %v96_v14 = vadd.f32 %v293_v12, %v95_v13  ;;  %v333_v15 = vpop.f32.mrb[1].mxu0 }
  0xdf   :  { %v98_v16 = vpop.f32.mrb[2].mxu0 }
  0xe0   :  { %v298_v17 = vmul.f32 -1.442695, %v96_v14  ;;  %v99_v18 = vadd.f32 %v293_v12, %v98_v16  ;;  %v334_v19 = vpop.f32.mrb[3].mxu0 }
  0xe2   :  { %369 = vpow2.f32 %v298_v17  ;;  %v299_v20 = vmul.f32 -1.442695, %v99_v18 }
  0xe4   :  { %371 = vpow2.f32 %v299_v20 }
  0xec   :  { %v370_v21 = vpop.eup %369 }
  0xed   :  { %v108_v22 = vadd.f32 1.0, %v370_v21 }
  0xee   :  { %v372_v23 = vpop.eup %371 }
  0xef   :  { %373 = vrcp.f32 %v108_v22  ;;  %v109_v24 = vadd.f32 1.0, %v372_v23 }
  0xf1   :  { %375 = vrcp.f32 %v109_v24 }
  0xf9   :  { %v374_v25 = vpop.eup %373 }
  0xfa   :  { %v114_v27 = vmul.f32 %v374_v25, %v96_v14 }
  0xfb   :  { %v376_v26 = vpop.eup %375 }
  0xfc   :  { %v115_v28 = vmul.f32 %v376_v26, %v99_v18 }
  0xfe   :  { %v116_v29 = vpack.c.bf16 %v115_v28, %v114_v27 }
 0x100   :  { %352 = vmatmul.mubr.bf16.vlgmr.msra.gmra.mrb[0].mxu1 %v116_v29 }
 0x1d3   :  { %v222_v32 = vpop.f32.mrb[0].mxu1 }
 0x1d4   :  { %v223_v33 = vadd.f32 %v300_v30, %v222_v32  ;;  %v353_v34 = vpop.f32.mrb[1].mxu1 }
 0x1d5   :  { %v225_v36 = vpop.f32.mrb[2].mxu1 }
 0x1d6   :  { %v226_v37 = vadd.f32 %v300_v30, %v225_v36  ;;  %v354_v38 = vpop.f32.mrb[3].mxu1  ;;  %v231_v39 = vadd.f32 %v229_v31, %v223_v33 }
 0x1d8   :  { %v235_v40 = vsel %vm57_vm1, %v231_v39, 0.0  ;;  %v232_v41 = vadd.f32 %v230_v35, %v226_v37 }
 0x1d9   :  { %236 = vadd.xlane.f32.xlu0 %v235_v40 }
 0x1da   :  { %v238_v42 = vsel %vm57_vm1, %v232_v41, 0.0 }
 0x1dd   :  { %239 = vadd.xlane.f32.xlu0 %v238_v42 }
 0x266   :  { %v237_v43 = vpop.xlane.xlu0 %236 }
 0x267   :  { %v242_v44 = vmul.f32 0.03125, %v237_v43 }
 0x269   :  { %v244_v45 = vsub.f32 %v231_v39, %v242_v44 }
 0x26a   :  { %v240_v46 = vpop.xlane.xlu0 %239 }
 0x26b   :  { %v243_v47 = vmul.f32 0.03125, %v240_v46  ;;  %v246_v48 = vmul.f32 %v244_v45, %v244_v45 }
 0x26d   :  { %v245_v49 = vsub.f32 %v232_v41, %v243_v47  ;;  %v248_v50 = vsel %vm57_vm1, %v246_v48, 0.0 }
 0x26e   :  { %249 = vadd.xlane.f32.xlu1 %v248_v50 }
 0x26f   :  { %v247_v51 = vmul.f32 %v245_v49, %v245_v49 }
 0x271   :  { %v251_v52 = vsel %vm57_vm1, %v247_v51, 0.0 }
 0x272   :  { %252 = vadd.xlane.f32.xlu1 %v251_v52 }
 0x2fb   :  { %v250_v53 = vpop.xlane.xlu1 %249 }
 0x2fc   :  { %v254_v54 = vmul.f32 0.03125, %v250_v53 }
 0x2fe   :  { %v256_v55 = vadd.f32 1e-05, %v254_v54 }
 0x2ff   :  { %v253_v56 = vpop.xlane.xlu1 %252 }
 0x300   :  { %377 = vrsqrt.f32 %v256_v55  ;;  %v255_v57 = vmul.f32 0.03125, %v253_v56 }
 0x302   :  { %v257_v58 = vadd.f32 1e-05, %v255_v57 }
 0x304   :  { %379 = vrsqrt.f32 %v257_v58 }
 0x30a   :  { %v378_v59 = vpop.eup %377 }
 0x30b   :  { %v260_v61 = vmul.f32 %v378_v59, %v244_v45 }
 0x30d   :  { %v268_v63 = vmul.f32 %v309_v60, %v260_v61 }
 0x30e   :  { %v380_v0 = vpop.eup %379 }
 0x30f   :  { %v276_v1 = vadd.f32 %v310_v62, %v268_v63  ;;  %v261_v2 = vmul.f32 %v380_v0, %v245_v49 }
 0x311   :  { %v313_v3 = vpack.c.bf16 %v276_v1, %v276_v1  ;;  %v269_v4 = vmul.f32 %v309_v60, %v261_v2 }
 0x313   :  { %287 = vst.msk [vmem:[%s491_s7] sm:$0xf] %vm286_vm2, %v313_v3  ;;  %v277_v5 = vadd.f32 %v310_v62, %v269_v4 }
 0x315   :  { %v314_v6 = vpack.c.bf16 %v277_v5, %v277_v5 }
 0x317   :  { %288 = vst.msk [vmem:[%s491_s7 + $0x4] sm:$0xf] %vm286_vm2, %v314_v6 }

// kernel: encoder_forward.22
= control target key start
LH: loop header
LB: loop body
LE: loop exit
PB: predicated region body
PF: predicated region fallthrough
CT: control target
= control target key end

     0   :  { %s547_s0 = inlined_call_operand.vmem [shape: s32[2], index: 0, kind: input, shape index: {}]   ;;  %s548_s1 = inlined_call_operand.vmem [shape: bf16[2,8,32], index: 1, kind: input, shape index: {}]   ;;  %s549_s2 = inlined_call_operand.vmem [shape: bf16[32,64], index: 2, kind: input, shape index: {}]   ;;  %s550_s3 = inlined_call_operand.vmem [shape: f32[1,64], index: 3, kind: input, shape index: {}]   ;;  %s551_s4 = inlined_call_operand.vmem [shape: bf16[2,8,32], index: 4, kind: output, shape index: {}]  }
   0x1   :  { %s9_s17 = sshll.u32 %s547_s0, 4  ;;  %s10_s17 = int_to_ptr.vmem [resolvable:$true] %s9_s17 }
   0x2   :  { %s432_s18 = scalar_lea.vmem %s10_s17, 16  ;;  %p437_p1 = scmp.lt.s32.totalorder %s10_s17, %s10_s17 }
   0x3   :  { %p433_p0 = scmp.ne.s32.totalorder %s10_s17, %s432_s18  ;;  %p438_p2 = scmp.lt.s32.totalorder %s432_s18, %s432_s18 }
   0x5   :  { %p439_p3 = por %p438_p2, %p437_p1 }
   0x7   :  { %p440_p4 = pnand %p439_p3, %p433_p0 }
   0x9   :  { %443 = shalt.err (!%p440_p4)  }
   0xa   :  { %s470_s19 = smov [#allocation3]  }
   0xb   :  { %12 = dma.vmem_to_smem %s10_s17, 16, %s470_s19, [#allocation2] }
   0xc   :  { %456 = dma.done.wait [#allocation2], 16 }
   0xd   :  { %457 = vsyncadd [#allocation2], 4294967280 }
   0xe   :  { %14 = sfence }
   0xf   :  { %s502_s20 = smov 0   ;;  %s504_s21 = smov 0  }
  0x10   :  { %s506_s22 = smov 0  }
  0x11 LB: > { %s32_s0 = sadd.s32 1, %s464_s21  ;;  %p377_p5 = scmp.ge.s32.totalorder %s468_s22, 1  ;;  %s468_s22 = sphi %s506_s22, %s20_s22   ;;  %s464_s21 = sphi %s504_s21, %s553_s21   ;;  %s460_s20 = sphi %s502_s20, %s552_s20  }
  0x12   : > { %p34_p6 = scmp.ge.s32.totalorder %s32_s0, 2  ;;  %p162_p7 = scmp.lt.s32.totalorder %s468_s22, 3 }
  0x14   : > { %s555_s0 = smov (%p34_p6, %s32_s0), 0  ;;  %p163_p8 = pnand %p377_p5, %p162_p7 }
  0x15   : > { %v426_v0 = vld [vmem:[%s549_s2] sm:$0xff] (!%p163_p8)   ;;  %v471_v1 = vmov (!%p163_p8), 0.0   ;;  %v208_v2 = vlaneseq (!%p163_p8)  ;;  %v427_v3 = vld [vmem:[%s549_s2 + $0x8] sm:$0xff] (!%p163_p8)   ;;  %vm472_vm0 = vmmov (!%p163_p8), 0   ;;  %p190_p9 = scmp.lt.s32.totalorder (!%p163_p8), %s460_s20, 1  ;;  %s205_s27 = sld [smem:[#allocation3 + %s460_s20]] (!%p163_p8) }
  0x16   : > { %166 = sbr.rel (%p163_p8) target bundleno = 394 (0x18a), region = 32  ;;  %390 = vmatprep.subr.bf16.mxu0 (!%p163_p8), %v471_v1  ;;  %394 = vmatprep.mubr.msk.bf16.mxu0 (!%p163_p8), %vm472_vm0, %v471_v1  ;;  %vm241_vm2 = vcmask (!%p163_p8), 261120   ;;  %v380_v8 = vld [vmem:[%s550_s3] ss:$0 sm:$0xff] (!%p163_p8)  ;;  %s473_s8 = smov (!%p163_p8), 96   ;;  %vm297_vm4 = vcmask (!%p163_p8), 257024  }
  0x17   : > { %391 = vmatpush3.bf16.msra.mxu0 (!%p163_p8), %v426_v0  ;;  %v209_v4 = vshrl.u32 (!%p163_p8), %v208_v2, 7 }
  0x18   : > { %392 = vmatprep.subr.bf16.mxu0 (!%p163_p8), %v471_v1 }
  0x1b   : > { %393 = vmatpush3.bf16.msra.mxu0 (!%p163_p8), %v427_v3  ;;  %v212_v6 = vstv (!%p163_p8), %s205_s27 }
  0x1c   : > { %vm213_vm1 = vcmp.lt.s32.totalorder (!%p163_p8), %v209_v4, %v212_v6 }
  0x1d   : > { %s557_s20 = smov (!%p190_p9, %s460_s20), 1  ;;  %vm216_vm3 = vmpackc.low %vm213_vm1, %vm213_vm1 }
  0x1e   : > { %s378_s28 = sshll.u32 %s557_s20, 2 }
  0x1f   : > { %s196_s5 = scalar_lea.vmem %s548_s1, %s378_s28  ;;  %s203_s11 = scalar_lea.vmem %s551_s4, %s378_s28 }
  0x20   : > { %v206_v5 = vld [vmem:[%s196_s5] sm:$0xf] }
  0x21   : > { %v217_v7 = vsel %vm216_vm3, %v206_v5, 0 }
  0x22   : > { %395 = vmatmul.mubr.msk.bf16.vlgmr.msra.gmra.mrb[0].mxu0 %vm241_vm2, %v217_v7 }
  0xf5   : > { %v279_v9 = vpop.f32.mrb[0].mxu0 }
  0xf6   : > { %v280_v10 = vadd.f32 %v380_v8, %v279_v9  ;;  %v396_v11 = vpop.f32.mrb[1].mxu0 }
  0xf7   : > { %v282_v12 = vpop.f32.mrb[2].mxu0 }
  0xf8   : > { %v384_v13 = vmul.f32 -1.442695, %v280_v10  ;;  %v397_v14 = vpop.f32.mrb[3].mxu0 }
  0xfa   : > { %428 = vpow2.f32 %v384_v13 }
 0x104   : > { %v429_v15 = vpop.eup %428 }
 0x105   : > { %v288_v16 = vadd.f32 1.0, %v429_v15 }
 0x107   : > { %430 = vrcp.f32 %v288_v16 }
 0x111   : > { %v431_v17 = vpop.eup %430 }
 0x112   : > { %292 = vrot.lane.b32.xlu0 %v431_v17, %s473_s8 }
 0x184   : > { %v293_v18 = vpop.permute.xlu0 %292 }
 0x185   : > { %v295_v19 = vmul.f32 %v293_v18, %v280_v10 }
 0x187   : > { %v296_v20 = vpack.c.bf16 %v295_v19, %v295_v19 }
 0x189   : > { %298 = vst.msk [vmem:[%s203_s11] sm:$0xf] %vm297_vm4, %v296_v20 }
 0x18a PF: > { %s20_s22 = sadd.s32 1, %s468_s22   ;;  %s552_s20 = smov %s464_s21 }
 0x18b   : > { %p17_p10 = scmp.ge.s32.totalorder %s20_s22, 4   ;;  %s553_s21 = smov %s555_s0 }
 0x18d   :  { %19 = sbr.rel (!%p17_p10) target bundleno = 17 (0x11), region = 62 }

// kernel: encoder_forward.23
= control target key start
LH: loop header
LB: loop body
LE: loop exit
PB: predicated region body
PF: predicated region fallthrough
CT: control target
= control target key end

     0   :  { %s465_s18 = smov 0   ;;  %s502_s0 = inlined_call_operand.vmem [shape: bf16[2,8,32], index: 0, kind: input, shape index: {}]   ;;  %s503_s1 = inlined_call_operand.vmem [shape: f32[7,32], index: 1, kind: input, shape index: {}]   ;;  %s504_s2 = inlined_call_operand.vmem [shape: f32[1,32], index: 2, kind: input, shape index: {}]   ;;  %s505_s3 = inlined_call_operand.vmem [shape: f32[1,32], index: 3, kind: input, shape index: {}]   ;;  %s506_s4 = inlined_call_operand.vmem [shape: f32[1,32], index: 4, kind: input, shape index: {}]   ;;  %s507_s5 = inlined_call_operand.vmem [shape: bf16[2,8,32], index: 5, kind: output, shape index: {}]  }
   0x1 LB: > { %s402_s19 = sadd.s32 4294967295, %s433_s18   ;;  %p406_p0 = scmp.ge.s32.totalorder %s433_s18, 1  ;;  %s433_s18 = sphi %s465_s18, %s15_s18  }
   0x2   : > { %p186_p1 = scmp.lt.s32.totalorder %s433_s18, 3 }
   0x4   : > { %p187_p2 = pnand %p406_p0, %p186_p1 }
   0x5   : > { %p212_p3 = scmp.lt.s32.totalorder (!%p187_p2), %s402_s19, 1  ;;  %v222_v0 = vlaneseq (!%p187_p2)  ;;  %v224_v2 = vld [vmem:[%s503_s1] sm:$0x7f] (!%p187_p2)  ;;  %vm347_vm6 = vcmask (!%p187_p2), 257024  }
   0x6   : > { %190 = sbr.rel (%p187_p2) target bundleno = 73 (0x49), region = 40  ;;  %v409_v49 = vld [vmem:[%s504_s2] ss:$0 sm:$0xff] (!%p187_p2) }
   0x7   : > { %v223_v1 = vshrl.u32 (!%p187_p2), %v222_v0, 7  ;;  %v410_v51 = vld [vmem:[%s505_s3] ss:$0 sm:$0xff] (!%p187_p2) }
   0x8   : > { %v411_v53 = vld [vmem:[%s506_s4] ss:$0 sm:$0xff] (!%p187_p2) }
   0x9   : > { %v226_v3 = vadd.s32 (!%p187_p2), 4294967293, %v223_v1  ;;  %v235_v4 = vsub.s32 (!%p187_p2), 0, %v223_v1  ;;  %v240_v5 = vadd.s32 (!%p187_p2), 4294967294, %v223_v1  ;;  %v249_v6 = vsub.s32 (!%p187_p2), 1, %v223_v1 }
   0xa   : > { %v254_v7 = vadd.s32 (!%p187_p2), 4294967295, %v223_v1  ;;  %v263_v8 = vsub.s32 (!%p187_p2), 2, %v223_v1  ;;  %v269_v9 = vsub.s32 (!%p187_p2), 3, %v223_v1  ;;  %v274_v11 = vadd.s32 (!%p187_p2), 1, %v223_v1 }
   0xb   : > { %vm227_vm0 = vcmp.ge.s32.totalorder (!%p187_p2), %v226_v3, 0  ;;  %v236_v13 = vrot.slane (!%p187_p2), %v224_v2, %v235_v4  ;;  %vm241_vm1 = vcmp.ge.s32.totalorder (!%p187_p2), %v240_v5, 0  ;;  %v250_v14 = vrot.slane (!%p187_p2), %v224_v2, %v249_v6 }
   0xc   : > { %vm255_vm2 = vcmp.ge.s32.totalorder (!%p187_p2), %v254_v7, 0  ;;  %v264_v15 = vrot.slane (!%p187_p2), %v224_v2, %v263_v8  ;;  %v283_v16 = vsub.s32 (!%p187_p2), 4, %v223_v1  ;;  %v288_v17 = vadd.s32 (!%p187_p2), 2, %v223_v1 }
   0xd   : > { %s509_s19 = smov (!%p212_p3, %s402_s19), 1  ;;  %v270_v21 = vrot.slane %v224_v2, %v269_v9  ;;  %vm276_vm3 = vcmp.lt.s32.totalorder %v274_v11, 8  ;;  %v297_v24 = vsub.s32 5, %v223_v1  ;;  %v302_v34 = vadd.s32 3, %v223_v1 }
   0xe   : > { %s407_s22 = sshll.u32 %s509_s19, 2  ;;  %v284_v23 = vrot.slane %v224_v2, %v283_v16  ;;  %vm290_vm4 = vcmp.lt.s32.totalorder %v288_v17, 8  ;;  %v311_v38 = vsub.s32 6, %v223_v1 }
   0xf   : > { %s215_s25 = scalar_lea.vmem %s502_s0, %s407_s22  ;;  %v298_v37 = vrot.slane %v224_v2, %v297_v24  ;;  %vm304_vm5 = vcmp.lt.s32.totalorder %v302_v34, 8  ;;  %s219_s9 = scalar_lea.vmem %s507_s5, %s407_s22 }
  0x10   : > { %v220_v10 = vld [vmem:[%s215_s25] sm:$0xf]  ;;  %v312_v42 = vrot.slane %v224_v2, %v311_v38 }
  0x11   : > { %v221_v12 = vunpack.c.l.bf16 %v220_v10 }
  0x13   : > { %v225_v18 = vrot.slane %v221_v12, 5  ;;  %v239_v19 = vrot.slane %v221_v12, 6  ;;  %v253_v20 = vrot.slane %v221_v12, 7  ;;  %v273_v22 = vrot.slane %v221_v12, 1 }
  0x14   : > { %v287_v28 = vrot.slane %v221_v12, 2  ;;  %v301_v33 = vrot.slane %v221_v12, 3  ;;  %v271_v36 = vmul.f32 %v270_v21, %v221_v12 }
  0x15   : > { %v232_v25 = vsel %vm227_vm0, %v225_v18, 0.0  ;;  %v246_v26 = vsel %vm241_vm1, %v239_v19, 0.0  ;;  %v260_v27 = vsel %vm255_vm2, %v253_v20, 0.0  ;;  %v280_v32 = vsel %vm276_vm3, %v273_v22, 0.0 }
  0x16   : > { %v237_v29 = vmul.f32 %v236_v13, %v232_v25  ;;  %v251_v30 = vmul.f32 %v250_v14, %v246_v26  ;;  %v265_v31 = vmul.f32 %v264_v15, %v260_v27  ;;  %v294_v39 = vsel %vm290_vm4, %v287_v28, 0.0 }
  0x17   : > { %v285_v41 = vmul.f32 %v284_v23, %v280_v32  ;;  %v308_v43 = vsel %vm304_vm5, %v301_v33, 0.0  ;;  %v299_v45 = vmul.f32 %v298_v37, %v294_v39 }
  0x18   : > { %v252_v35 = vadd.f32 %v251_v30, %v237_v29  ;;  %v313_v47 = vmul.f32 %v312_v42, %v308_v43 }
  0x1a   : > { %v266_v40 = vadd.f32 %v265_v31, %v252_v35 }
  0x1c   : > { %v272_v44 = vadd.f32 %v271_v36, %v266_v40 }
  0x1e   : > { %v286_v46 = vadd.f32 %v285_v41, %v272_v44 }
  0x20   : > { %v300_v48 = vadd.f32 %v299_v45, %v286_v46 }
  0x22   : > { %v314_v50 = vadd.f32 %v313_v47, %v300_v48 }
  0x24   : > { %v322_v52 = vadd.f32 %v409_v49, %v314_v50 }
  0x26   : > { %v330_v54 = vmul.f32 %v410_v51, %v322_v52 }
  0x28   : > { %v338_v55 = vadd.f32 %v411_v53, %v330_v54 }
  0x2a   : > { %v412_v56 = vmul.f32 -1.442695, %v338_v55 }
  0x2c   : > { %423 = vpow2.f32 %v412_v56 }
  0x36   : > { %v424_v57 = vpop.eup %423 }
  0x37   : > { %v342_v58 = vadd.f32 1.0, %v424_v57 }
  0x39   : > { %425 = vrcp.f32 %v342_v58 }
  0x43   : > { %v426_v59 = vpop.eup %425 }
  0x44   : > { %v345_v60 = vmul.f32 %v426_v59, %v338_v55 }
  0x46   : > { %v346_v61 = vpack.c.bf16 %v345_v60, %v345_v60 }
  0x48   : > { %348 = vst.msk [vmem:[%s219_s9] sm:$0xf] %vm347_vm6, %v346_v61 }
  0x49 PF: > { %s15_s18 = sadd.s32 1, %s433_s18  }
  0x4a   : > { %p12_p4 = scmp.ge.s32.totalorder %s15_s18, 4  }
  0x4c   :  { %14 = sbr.rel (!%p12_p4) target bundleno = 1 (0x1), region = 70 }

</bundles_post_ra>
